<compile_context>
chip_gen: v7x
topology: tpu7x:2x2x1
jax: 0.10.0
libtpu: 0.0.40
codegen_flags: <defaults>
</compile_context>

<pallas_src>
import functools

import jax
import jax.numpy as jnp
import numpy as np
from jax import lax
from jax.experimental import pallas as pl
from jax.experimental.pallas import tpu as pltpu


# ------------------------------ Pallas kernel -------------------------------

def _csp_kernel(xs_ref, vmask_ref, hmask_ref,
                wcv1_ref, bcv1_ref, wcv2_ref, o2_ref, w4b_ref,
                wb1_ref, bb1_ref, wb2_ref, bb2_ref,
                wcv3_ref, o1_ref, w4a_ref, b4_ref,
                o_ref, *, W, R, halo, n_blocks, compute_dtype):
    cdt = compute_dtype
    S_pad = xs_ref.shape[-1]          # lane-padded slab length, multiple of 128
    lo, RW = halo * W, R * W          # main strip = lanes [lo, lo + RW)

    def silu(v):
        return v * jax.nn.sigmoid(v)

    def mxu(w, v):                    # MXU matmul, f32 accumulation
        return jnp.dot(w, v, preferred_element_type=jnp.float32)

    x = xs_ref[0, 0]                  # (ci, S_pad)  compute dtype, haloed strip
    vmask = vmask_ref[0]              # (1, S_pad)   f32, rows inside the image
    hmask = hmask_ref[...]            # (3, S_pad)   f32, dw in {-1,0,+1} taps

    # cv1 (1x1 conv + folded BN + SiLU) over the whole haloed slab: the halo
    # rows of `a` feed the 3x3 taps of the bottleneck chain.
    a = silu(mxu(wcv1_ref[...], x) + bcv1_ref[...])              # (c_, S_pad) f32

    # cv2 branch (+ its BN offset / SiLU / cv4 contribution) right away so the
    # live range of x ends here.
    x_main = x[:, lo:lo + RW]
    z2 = silu(mxu(wcv2_ref[...], x_main) + o2_ref[...])          # (c_, RW) f32
    out_acc = mxu(w4b_ref[...], z2.astype(cdt))                  # (co, RW) f32

    # n x Bottleneck(c_, c_, shortcut=True, e=1.0), all VMEM resident.
    for j in range(n_blocks):
        b1 = silu(mxu(wb1_ref[j], a.astype(cdt)) + bb1_ref[j])   # (c_, S_pad)
        b1 = b1 * vmask            # zero out-of-image rows == SAME zero padding
        # 3x3 conv as im2col: 9 rolled + masked copies stacked on the channel
        # axis feed one MXU matmul with K = 9*c_.
        parts = []
        for t in range(9):
            dh, dw = t // 3 - 1, t % 3 - 1
            off = dh * W + dw
            r = b1 if off == 0 else pltpu.roll(b1, (-off) % S_pad, 1)
            parts.append(r * hmask[dw + 1:dw + 2, :])
        stacked = jnp.concatenate(parts, axis=0).astype(cdt)     # (9*c_, S_pad)
        a = a + silu(mxu(wb2_ref[j], stacked) + bb2_ref[j])      # residual add

    # y1 = cv3(m(cv1(x))) with the BN scale folded into wcv3, then the
    # concat-free BN + SiLU + cv4 combine.
    a_main = a[:, lo:lo + RW]
    z1 = silu(mxu(wcv3_ref[...], a_main.astype(cdt)) + o1_ref[...])
    out = silu(mxu(w4a_ref[...], z1.astype(cdt)) + out_acc + b4_ref[...])
    o_ref[0] = out.astype(o_ref.dtype)


# ------------------------------ wrapper / glue -------------------------------

def _per_step_vmem_bytes(ci, c_, co, n, R, W, halo, cdt_bytes):
    """Rough per-grid-step VMEM footprint (inputs double-buffered + temporaries)."""
    S_len = (R + 2 * halo) * W
    S_pad = -(-S_len // 128) * 128
    RW = R * W
    b = 2 * ci * S_pad * cdt_bytes                       # x slab (double buffered)
    b += 2 * co * RW * 4                                 # output block (double buffered)
    b += 2 * c_ * S_pad * 4                              # a + b1 (f32)
    b += 9 * c_ * S_pad * 4                              # im2col stack (f32 before cast)
    b += (2 * c_ + co) * RW * 4                          # z1 / z2 / out temporaries
    b += (2 * ci * c_ + (n + 1) * c_ * c_ + 9 * n * c_ * c_ + 2 * c_ * co) * cdt_bytes
    b += 5 * S_pad * 4                                   # masks
    return b


def _pick_strip_rows(H, W, ci, c_, co, n, halo, cdt_bytes, budget_bytes):
    cands = [r for r in range(1, H + 1)
             if H % r == 0 and ((r * W) % 128 == 0 or r == H)]
    fitting = [r for r in cands
               if _per_step_vmem_bytes(ci, c_, co, n, r, W, halo, cdt_bytes)
               <= budget_bytes]
    if fitting:
        return max(fitting)          # biggest strip that fits the budget
    return min(cands)                # nothing fits; take the smallest legal strip


def bottleneck_csp(x_nchw, params, *, strip_rows=None,
                   compute_dtype=jnp.float32, single_buffer_weights=True,
                   vmem_budget_bytes=24 * 2**20):
    """Fused BottleneckCSP forward. x_nchw: (N, ci, H, W) -> (N, co, H, W)."""
    N, ci, H, W = x_nchw.shape
    c_ = params["cv1_w"].shape[0]
    co = params["cv4_w"].shape[0]
    n = len(params["blocks"])
    halo = n                           # 3x3 receptive field grows 1 row / block
    cdt = compute_dtype
    cdt_bytes = jnp.dtype(cdt).itemsize

    R = strip_rows if strip_rows is not None else _pick_strip_rows(
        H, W, ci, c_, co, n, halo, cdt_bytes, vmem_budget_bytes)
    if H % R != 0 or (R < H and (R * W) % 128 != 0):
        R = H                          # whole-image fallback (still correct)
    num_strips = H // R
    rows = R + 2 * halo
    S_len = rows * W
    S_pad = -(-S_len // 128) * 128     # lane-pad the slab to a multiple of 128
    RW = R * W

    # ---- HBM-side prep: haloed / lane-padded strips (pure layout) -----------
    xp = jnp.pad(x_nchw, ((0, 0), (0, 0), (halo, halo), (0, 0)))
    row_ids = np.arange(num_strips)[:, None] * R + np.arange(rows)[None, :]
    slabs = jnp.moveaxis(xp[:, :, row_ids, :], 2, 1)     # (N, ns, ci, rows, W)
    slabs = slabs.reshape(N, num_strips, ci, S_len)
    if S_pad > S_len:
        slabs = jnp.pad(slabs, ((0, 0), (0, 0), (0, 0), (0, S_pad - S_len)))
    x_slabs = slabs.astype(cdt)

    # ---- precomputed masks (host constants, hoisted out of the kernel) ------
    p = np.arange(S_pad)
    in_slab = p < S_len
    slab_row = p // W
    wpos = p % W
    vmask = np.stack([((s * R - halo + slab_row >= 0)
                       & (s * R - halo + slab_row < H) & in_slab)
                      for s in range(num_strips)]).astype(np.float32)
    hmask = np.stack([((wpos + dw >= 0) & (wpos + dw < W) & in_slab)
                      for dw in (-1, 0, 1)]).astype(np.float32)
    vmask = jnp.asarray(vmask)[:, None, :]               # (ns, 1, S_pad)
    hmask = jnp.asarray(hmask)                           # (3, S_pad)

    # ---- fold BN(2c_) scales into cv2/cv3; pack / cast weights ---------------
    s1, s2 = params["bn_scale"][:c_], params["bn_scale"][c_:]
    o1, o2 = params["bn_bias"][:c_], params["bn_bias"][c_:]
    wcv1 = params["cv1_w"].astype(cdt)
    wcv2 = (params["cv2_w"] * s2).astype(cdt)
    wcv3 = (params["cv3_w"] * s1).astype(cdt)
    w4a = params["cv4_w"][:, :c_].astype(cdt)
    w4b = params["cv4_w"][:, c_:].astype(cdt)
    wb1 = jnp.stack([b["b1_w"] for b in params["blocks"]]).astype(cdt)
    bb1 = jnp.stack([b["b1_b"] for b in params["blocks"]])
    # 3x3 OIHW -> (n, c_, 9*c_), column block t = tap (kh*3+kw), for one im2col dot
    wb2 = jnp.stack([jnp.transpose(b["b2_w"], (0, 2, 3, 1)).reshape(c_, 9 * c_)
                     for b in params["blocks"]]).astype(cdt)
    bb2 = jnp.stack([b["b2_b"] for b in params["blocks"]])

    args = (x_slabs, vmask, hmask,
            wcv1, params["cv1_b"], wcv2, o2, w4b,
            wb1, bb1, wb2, bb2,
            wcv3, o1, w4a, params["cv4_b"])

    def const_spec(arr):
        nd = arr.ndim
        if single_buffer_weights:
            return pl.BlockSpec(arr.shape, lambda i, s, nd=nd: (0,) * nd,
                                pipeline_mode=pl.Buffered(1))
        return pl.BlockSpec(arr.shape, lambda i, s, nd=nd: (0,) * nd)

    in_specs = [pl.BlockSpec((1, 1, ci, S_pad), lambda i, s: (i, s, 0, 0)),
                pl.BlockSpec((1, 1, S_pad), lambda i, s: (s, 0, 0))]
    in_specs += [const_spec(a) for a in args[2:]]

    est = _per_step_vmem_bytes(ci, c_, co, n, R, W, halo, cdt_bytes)
    vmem_limit = int(min(64 * 2**20, max(32 * 2**20, 2 * est)))

    out = pl.pallas_call(
        functools.partial(_csp_kernel, W=W, R=R, halo=halo, n_blocks=n,
                          compute_dtype=cdt),
        out_shape=jax.ShapeDtypeStruct((N, co, H * W), x_nchw.dtype),
        grid=(N, num_strips),
        in_specs=in_specs,
        out_specs=pl.BlockSpec((1, co, RW), lambda i, s: (i, 0, s)),
        compiler_params=pltpu.CompilerParams(
            dimension_semantics=("parallel", "parallel"),
            vmem_limit_bytes=vmem_limit),
    )(*args)
    return out.reshape(N, co, H, W)


# --------------------------- parameters (glue) ------------------------------

def _bn_stats(key, c):
    k1, k2, k3, k4 = jax.random.split(key, 4)
    gamma = 1.0 + 0.1 * jax.random.normal(k1, (c,), jnp.float32)
    beta = 0.1 * jax.random.normal(k2, (c,), jnp.float32)
    mean = 0.1 * jax.random.normal(k3, (c,), jnp.float32)
    var = 0.5 + 0.5 * jnp.abs(jax.random.normal(k4, (c,), jnp.float32))
    return gamma, beta, mean, var


def _fold_bn(w, gamma, beta, mean, var, eps=1e-5):
    scale = gamma / jnp.sqrt(var + eps)
    wf = w * scale.reshape((-1,) + (1,) * (w.ndim - 1))
    bf = beta - mean * scale
    return wf, bf


def make_conv_bn_1x1(key, cin, cout):
    kw, kb = jax.random.split(key)
    w = jax.random.normal(kw, (cout, cin), jnp.float32) / np.sqrt(cin)
    wf, bf = _fold_bn(w, *_bn_stats(kb, cout))
    return wf, bf.reshape(cout, 1)


def make_conv_bn_3x3(key, cin, cout):
    kw, kb = jax.random.split(key)
    w = jax.random.normal(kw, (cout, cin, 3, 3), jnp.float32) / np.sqrt(cin * 9)
    wf, bf = _fold_bn(w, *_bn_stats(kb, cout))
    return wf, bf.reshape(cout, 1)


def make_csp_params(key, ci, co, n=1, e=0.5):
    c_ = int(co * e)
    ks = jax.random.split(key, 6 + 2 * n)
    p = {}
    p["cv1_w"], p["cv1_b"] = make_conv_bn_1x1(ks[0], ci, c_)                     # Conv
    p["cv2_w"] = jax.random.normal(ks[1], (c_, ci), jnp.float32) / np.sqrt(ci)   # Conv2d
    p["cv3_w"] = jax.random.normal(ks[2], (c_, c_), jnp.float32) / np.sqrt(c_)   # Conv2d
    p["cv4_w"], p["cv4_b"] = make_conv_bn_1x1(ks[3], 2 * c_, co)                 # Conv
    g, b, m, v = _bn_stats(ks[4], 2 * c_)                                        # BN(2c_)
    scale = g / jnp.sqrt(v + 1e-5)
    p["bn_scale"] = scale.reshape(2 * c_, 1)
    p["bn_bias"] = (b - m * scale).reshape(2 * c_, 1)
    blocks = []
    for j in range(n):                                                           # Bottleneck x n
        b1w, b1b = make_conv_bn_1x1(ks[5 + 2 * j], c_, c_)
        b2w, b2b = make_conv_bn_3x3(ks[6 + 2 * j], c_, c_)
        blocks.append(dict(b1_w=b1w, b1_b=b1b, b2_w=b2w, b2_b=b2b))
    p["blocks"] = blocks
    return p


# --------------------------- pure-JAX reference -----------------------------

def _ref_csp(x, p):
    def conv1x1(v, w, b=None):
        y = lax.conv_general_dilated(v, w.reshape(w.shape + (1, 1)), (1, 1), "VALID",
                                     dimension_numbers=("NCHW", "OIHW", "NCHW"))
        if b is not None:
            y = y + b.reshape(1, -1, 1, 1)
        return y

    silu = jax.nn.silu
    a = silu(conv1x1(x, p["cv1_w"], p["cv1_b"]))
    for blk in p["blocks"]:
        t = silu(conv1x1(a, blk["b1_w"], blk["b1_b"]))
        t = lax.conv_general_dilated(t, blk["b2_w"], (1, 1), ((1, 1), (1, 1)),
                                     dimension_numbers=("NCHW", "OIHW", "NCHW"))
        t = silu(t + blk["b2_b"].reshape(1, -1, 1, 1))
        a = a + t
    y1 = conv1x1(a, p["cv3_w"])
    y2 = conv1x1(x, p["cv2_w"])
    z = jnp.concatenate([y1, y2], axis=1)
    z = silu(z * p["bn_scale"].reshape(1, -1, 1, 1) + p["bn_bias"].reshape(1, -1, 1, 1))
    return silu(conv1x1(z, p["cv4_w"], p["cv4_b"]))


# ---------------------------------- main -------------------------------------

if __name__ == "__main__":
    key = jax.random.PRNGKey(0)
    kx, kp = jax.random.split(key)

    N, ci, co, H, W = 2, 16, 16, 16, 16          # e=0.5 -> c_ = 8, n = 1
    x = jax.random.normal(kx, (N, ci, H, W), jnp.float32)
    params = make_csp_params(kp, ci, co, n=1, e=0.5)
    ref = np.asarray(_ref_csp(x, params))

    def run(cdt, sbw):
        fn = jax.jit(functools.partial(bottleneck_csp, params=params,
                                       strip_rows=8, compute_dtype=cdt,
                                       single_buffer_weights=sbw))
        return jax.block_until_ready(fn(x))

    # f32 compute path (tight numerical check against the XLA reference).
    try:
        out_f32 = run(jnp.float32, True)
        sbw = True
    except Exception:
        # Fallback for jax versions without Buffered(1) single-buffered weights.
        out_f32 = run(jnp.float32, False)
        sbw = False

    assert out_f32.shape == (N, co, H, W), out_f32.shape
    np.testing.assert_allclose(np.asarray(out_f32), ref, rtol=1e-3, atol=1e-3)

    # bf16 MXU inputs (f32 accumulation) -- looser tolerance.
    out_bf16 = run(jnp.bfloat16, sbw)
    np.testing.assert_allclose(np.asarray(out_bf16), ref, rtol=1e-1, atol=1e-1)

    print("KERNEL_OK")
</pallas_src>

<mosaic_0001>
module attributes {stable_mosaic.version = 11 : i64} {
  func.func @_csp_kernel(%arg0: i32, %arg1: i32, %arg2: memref<1x1x16x256xf32, #tpu.memory_space<vmem>>, %arg3: memref<1x1x256xf32, #tpu.memory_space<vmem>>, %arg4: memref<3x256xf32, #tpu.memory_space<vmem>>, %arg5: memref<8x16xf32, #tpu.memory_space<vmem>>, %arg6: memref<8x1xf32, #tpu.memory_space<vmem>>, %arg7: memref<8x16xf32, #tpu.memory_space<vmem>>, %arg8: memref<8x1xf32, #tpu.memory_space<vmem>>, %arg9: memref<16x8xf32, #tpu.memory_space<vmem>>, %arg10: memref<1x8x8xf32, #tpu.memory_space<vmem>>, %arg11: memref<1x8x1xf32, #tpu.memory_space<vmem>>, %arg12: memref<1x8x72xf32, #tpu.memory_space<vmem>>, %arg13: memref<1x8x1xf32, #tpu.memory_space<vmem>>, %arg14: memref<8x8xf32, #tpu.memory_space<vmem>>, %arg15: memref<8x1xf32, #tpu.memory_space<vmem>>, %arg16: memref<16x8xf32, #tpu.memory_space<vmem>>, %arg17: memref<16x1xf32, #tpu.memory_space<vmem>>, %arg18: memref<1x16x128xf32, #tpu.memory_space<vmem>>) attributes {dimension_semantics = [#tpu.dimension_semantics<parallel>, #tpu.dimension_semantics<parallel>], iteration_bounds = array<i64: 2, 2>, scalar_prefetch = 0 : i64, scratch_operands = 0 : i64, tpu.core_type = #tpu.core_type<tc>, window_params = [{transform_indices = @transform_0, window_bounds = array<i64: 1, 1, 16, 256>}, {transform_indices = @transform_1, window_bounds = array<i64: 1, 1, 256>}, {pipeline_mode = #tpu.pipeline_mode<synchronous>, transform_indices = @transform_2, window_bounds = array<i64: 3, 256>}, {pipeline_mode = #tpu.pipeline_mode<synchronous>, transform_indices = @transform_3, window_bounds = array<i64: 8, 16>}, {pipeline_mode = #tpu.pipeline_mode<synchronous>, transform_indices = @transform_4, window_bounds = array<i64: 8, 1>}, {pipeline_mode = #tpu.pipeline_mode<synchronous>, transform_indices = @transform_5, window_bounds = array<i64: 8, 16>}, {pipeline_mode = #tpu.pipeline_mode<synchronous>, transform_indices = @transform_6, window_bounds = array<i64: 8, 1>}, {pipeline_mode = #tpu.pipeline_mode<synchronous>, transform_indices = @transform_7, window_bounds = array<i64: 16, 8>}, {pipeline_mode = #tpu.pipeline_mode<synchronous>, transform_indices = @transform_8, window_bounds = array<i64: 1, 8, 8>}, {pipeline_mode = #tpu.pipeline_mode<synchronous>, transform_indices = @transform_9, window_bounds = array<i64: 1, 8, 1>}, {pipeline_mode = #tpu.pipeline_mode<synchronous>, transform_indices = @transform_10, window_bounds = array<i64: 1, 8, 72>}, {pipeline_mode = #tpu.pipeline_mode<synchronous>, transform_indices = @transform_11, window_bounds = array<i64: 1, 8, 1>}, {pipeline_mode = #tpu.pipeline_mode<synchronous>, transform_indices = @transform_12, window_bounds = array<i64: 8, 8>}, {pipeline_mode = #tpu.pipeline_mode<synchronous>, transform_indices = @transform_13, window_bounds = array<i64: 8, 1>}, {pipeline_mode = #tpu.pipeline_mode<synchronous>, transform_indices = @transform_14, window_bounds = array<i64: 16, 8>}, {pipeline_mode = #tpu.pipeline_mode<synchronous>, transform_indices = @transform_15, window_bounds = array<i64: 16, 1>}, {transform_indices = @transform_16, window_bounds = array<i64: 1, 16, 128>}]} {
    %c0 = arith.constant 0 : index
    %c0_0 = arith.constant 0 : index
    %c0_1 = arith.constant 0 : index
    %c0_2 = arith.constant 0 : index
    %0 = vector.load %arg2[%c0, %c0_0, %c0_1, %c0_2] : memref<1x1x16x256xf32, #tpu.memory_space<vmem>>, vector<1x1x16x256xf32>
    %1 = vector.shape_cast %0 : vector<1x1x16x256xf32> to vector<16x256xf32>
    %c0_3 = arith.constant 0 : index
    %c0_4 = arith.constant 0 : index
    %c0_5 = arith.constant 0 : index
    %2 = vector.load %arg3[%c0_3, %c0_4, %c0_5] : memref<1x1x256xf32, #tpu.memory_space<vmem>>, vector<1x1x256xf32>
    %3 = vector.shape_cast %2 : vector<1x1x256xf32> to vector<1x256xf32>
    %c0_6 = arith.constant 0 : index
    %c0_7 = arith.constant 0 : index
    %4 = vector.load %arg4[%c0_6, %c0_7] : memref<3x256xf32, #tpu.memory_space<vmem>>, vector<3x256xf32>
    %c0_8 = arith.constant 0 : index
    %c0_9 = arith.constant 0 : index
    %5 = vector.load %arg5[%c0_8, %c0_9] : memref<8x16xf32, #tpu.memory_space<vmem>>, vector<8x16xf32>
    %cst = arith.constant dense<0.000000e+00> : vector<8x256xf32>
    %6 = tpu.matmul %5, %1, %cst {dimension_numbers = #tpu.dot_dimension_numbers<[1], [0], [0], [1], [0, 0, 1, 1], [], []>} : vector<8x16xf32>, vector<16x256xf32>, vector<8x256xf32> -> vector<8x256xf32>
    %c0_10 = arith.constant 0 : index
    %c0_11 = arith.constant 0 : index
    %7 = vector.load %arg6[%c0_10, %c0_11] : memref<8x1xf32, #tpu.memory_space<vmem>>, vector<8x1xf32>
    %8 = vector.broadcast %7 : vector<8x1xf32> to vector<8x256xf32>
    %9 = arith.addf %6, %8 : vector<8x256xf32>
    %10 = arith.negf %9 : vector<8x256xf32>
    %11 = math.exp %10 : vector<8x256xf32>
    %cst_12 = arith.constant 1.000000e+00 : f32
    %12 = vector.broadcast %cst_12 : f32 to vector<8x256xf32>
    %13 = arith.addf %12, %11 : vector<8x256xf32>
    %14 = arith.divf %12, %13 : vector<8x256xf32>
    %15 = arith.mulf %9, %14 : vector<8x256xf32>
    %16 = vector.extract_strided_slice %1 {offsets = [0, 16], sizes = [16, 128], strides = [1, 1]} : vector<16x256xf32> to vector<16x128xf32>
    %c0_13 = arith.constant 0 : index
    %c0_14 = arith.constant 0 : index
    %17 = vector.load %arg7[%c0_13, %c0_14] : memref<8x16xf32, #tpu.memory_space<vmem>>, vector<8x16xf32>
    %cst_15 = arith.constant dense<0.000000e+00> : vector<8x128xf32>
    %18 = tpu.matmul %17, %16, %cst_15 {dimension_numbers = #tpu.dot_dimension_numbers<[1], [0], [0], [1], [0, 0, 1, 1], [], []>} : vector<8x16xf32>, vector<16x128xf32>, vector<8x128xf32> -> vector<8x128xf32>
    %c0_16 = arith.constant 0 : index
    %c0_17 = arith.constant 0 : index
    %19 = vector.load %arg8[%c0_16, %c0_17] : memref<8x1xf32, #tpu.memory_space<vmem>>, vector<8x1xf32>
    %20 = vector.broadcast %19 : vector<8x1xf32> to vector<8x128xf32>
    %21 = arith.addf %18, %20 : vector<8x128xf32>
    %22 = arith.negf %21 : vector<8x128xf32>
    %23 = math.exp %22 : vector<8x128xf32>
    %cst_18 = arith.constant 1.000000e+00 : f32
    %24 = vector.broadcast %cst_18 : f32 to vector<8x128xf32>
    %25 = arith.addf %24, %23 : vector<8x128xf32>
    %26 = arith.divf %24, %25 : vector<8x128xf32>
    %27 = arith.mulf %21, %26 : vector<8x128xf32>
    %c0_19 = arith.constant 0 : index
    %c0_20 = arith.constant 0 : index
    %28 = vector.load %arg9[%c0_19, %c0_20] : memref<16x8xf32, #tpu.memory_space<vmem>>, vector<16x8xf32>
    %cst_21 = arith.constant dense<0.000000e+00> : vector<16x128xf32>
    %29 = tpu.matmul %28, %27, %cst_21 {dimension_numbers = #tpu.dot_dimension_numbers<[1], [0], [0], [1], [0, 0, 1, 1], [], []>} : vector<16x8xf32>, vector<8x128xf32>, vector<16x128xf32> -> vector<16x128xf32>
    %c0_22 = arith.constant 0 : index
    %c0_23 = arith.constant 0 : index
    %c0_24 = arith.constant 0 : index
    %30 = vector.load %arg10[%c0_22, %c0_23, %c0_24] : memref<1x8x8xf32, #tpu.memory_space<vmem>>, vector<1x8x8xf32>
    %31 = vector.shape_cast %30 : vector<1x8x8xf32> to vector<8x8xf32>
    %cst_25 = arith.constant dense<0.000000e+00> : vector<8x256xf32>
    %32 = tpu.matmul %31, %15, %cst_25 {dimension_numbers = #tpu.dot_dimension_numbers<[1], [0], [0], [1], [0, 0, 1, 1], [], []>} : vector<8x8xf32>, vector<8x256xf32>, vector<8x256xf32> -> vector<8x256xf32>
    %c0_26 = arith.constant 0 : index
    %c0_27 = arith.constant 0 : index
    %c0_28 = arith.constant 0 : index
    %33 = vector.load %arg11[%c0_26, %c0_27, %c0_28] : memref<1x8x1xf32, #tpu.memory_space<vmem>>, vector<1x8x1xf32>
    %34 = vector.shape_cast %33 : vector<1x8x1xf32> to vector<8x1xf32>
    %35 = vector.broadcast %34 : vector<8x1xf32> to vector<8x256xf32>
    %36 = arith.addf %32, %35 : vector<8x256xf32>
    %37 = arith.negf %36 : vector<8x256xf32>
    %38 = math.exp %37 : vector<8x256xf32>
    %cst_29 = arith.constant 1.000000e+00 : f32
    %39 = vector.broadcast %cst_29 : f32 to vector<8x256xf32>
    %40 = arith.addf %39, %38 : vector<8x256xf32>
    %41 = arith.divf %39, %40 : vector<8x256xf32>
    %42 = arith.mulf %36, %41 : vector<8x256xf32>
    %43 = vector.broadcast %3 : vector<1x256xf32> to vector<8x256xf32>
    %44 = arith.mulf %42, %43 : vector<8x256xf32>
    %c17_i32 = arith.constant 17 : i32
    %45 = tpu.dynamic_rotate %44 by %c17_i32 dim 1 : vector<8x256xf32>, i32 -> vector<8x256xf32>
    %46 = vector.extract_strided_slice %4 {offsets = [0, 0], sizes = [1, 256], strides = [1, 1]} : vector<3x256xf32> to vector<1x256xf32>
    %47 = vector.broadcast %46 : vector<1x256xf32> to vector<8x256xf32>
    %48 = arith.mulf %45, %47 : vector<8x256xf32>
    %c16_i32 = arith.constant 16 : i32
    %49 = tpu.dynamic_rotate %44 by %c16_i32 dim 1 : vector<8x256xf32>, i32 -> vector<8x256xf32>
    %50 = vector.extract_strided_slice %4 {offsets = [1, 0], sizes = [1, 256], strides = [1, 1]} : vector<3x256xf32> to vector<1x256xf32>
    %51 = vector.broadcast %50 : vector<1x256xf32> to vector<8x256xf32>
    %52 = arith.mulf %49, %51 : vector<8x256xf32>
    %c15_i32 = arith.constant 15 : i32
    %53 = tpu.dynamic_rotate %44 by %c15_i32 dim 1 : vector<8x256xf32>, i32 -> vector<8x256xf32>
    %54 = vector.extract_strided_slice %4 {offsets = [2, 0], sizes = [1, 256], strides = [1, 1]} : vector<3x256xf32> to vector<1x256xf32>
    %55 = vector.broadcast %54 : vector<1x256xf32> to vector<8x256xf32>
    %56 = arith.mulf %53, %55 : vector<8x256xf32>
    %c1_i32 = arith.constant 1 : i32
    %57 = tpu.dynamic_rotate %44 by %c1_i32 dim 1 : vector<8x256xf32>, i32 -> vector<8x256xf32>
    %58 = vector.extract_strided_slice %4 {offsets = [0, 0], sizes = [1, 256], strides = [1, 1]} : vector<3x256xf32> to vector<1x256xf32>
    %59 = vector.broadcast %58 : vector<1x256xf32> to vector<8x256xf32>
    %60 = arith.mulf %57, %59 : vector<8x256xf32>
    %61 = vector.extract_strided_slice %4 {offsets = [1, 0], sizes = [1, 256], strides = [1, 1]} : vector<3x256xf32> to vector<1x256xf32>
    %62 = vector.broadcast %61 : vector<1x256xf32> to vector<8x256xf32>
    %63 = arith.mulf %44, %62 : vector<8x256xf32>
    %c255_i32 = arith.constant 255 : i32
    %64 = tpu.dynamic_rotate %44 by %c255_i32 dim 1 : vector<8x256xf32>, i32 -> vector<8x256xf32>
    %65 = vector.extract_strided_slice %4 {offsets = [2, 0], sizes = [1, 256], strides = [1, 1]} : vector<3x256xf32> to vector<1x256xf32>
    %66 = vector.broadcast %65 : vector<1x256xf32> to vector<8x256xf32>
    %67 = arith.mulf %64, %66 : vector<8x256xf32>
    %c241_i32 = arith.constant 241 : i32
    %68 = tpu.dynamic_rotate %44 by %c241_i32 dim 1 : vector<8x256xf32>, i32 -> vector<8x256xf32>
    %69 = vector.extract_strided_slice %4 {offsets = [0, 0], sizes = [1, 256], strides = [1, 1]} : vector<3x256xf32> to vector<1x256xf32>
    %70 = vector.broadcast %69 : vector<1x256xf32> to vector<8x256xf32>
    %71 = arith.mulf %68, %70 : vector<8x256xf32>
    %c240_i32 = arith.constant 240 : i32
    %72 = tpu.dynamic_rotate %44 by %c240_i32 dim 1 : vector<8x256xf32>, i32 -> vector<8x256xf32>
    %73 = vector.extract_strided_slice %4 {offsets = [1, 0], sizes = [1, 256], strides = [1, 1]} : vector<3x256xf32> to vector<1x256xf32>
    %74 = vector.broadcast %73 : vector<1x256xf32> to vector<8x256xf32>
    %75 = arith.mulf %72, %74 : vector<8x256xf32>
    %c239_i32 = arith.constant 239 : i32
    %76 = tpu.dynamic_rotate %44 by %c239_i32 dim 1 : vector<8x256xf32>, i32 -> vector<8x256xf32>
    %77 = vector.extract_strided_slice %4 {offsets = [2, 0], sizes = [1, 256], strides = [1, 1]} : vector<3x256xf32> to vector<1x256xf32>
    %78 = vector.broadcast %77 : vector<1x256xf32> to vector<8x256xf32>
    %79 = arith.mulf %76, %78 : vector<8x256xf32>
    %80 = tpu.concatenate %48, %52, %56, %60, %63, %67, %71, %75, %79 in 0 : vector<8x256xf32>, vector<8x256xf32>, vector<8x256xf32>, vector<8x256xf32>, vector<8x256xf32>, vector<8x256xf32>, vector<8x256xf32>, vector<8x256xf32>, vector<8x256xf32> -> vector<72x256xf32>
    %c0_30 = arith.constant 0 : index
    %c0_31 = arith.constant 0 : index
    %c0_32 = arith.constant 0 : index
    %81 = vector.load %arg12[%c0_30, %c0_31, %c0_32] : memref<1x8x72xf32, #tpu.memory_space<vmem>>, vector<1x8x72xf32>
    %82 = vector.shape_cast %81 : vector<1x8x72xf32> to vector<8x72xf32>
    %cst_33 = arith.constant dense<0.000000e+00> : vector<8x256xf32>
    %83 = tpu.matmul %82, %80, %cst_33 {dimension_numbers = #tpu.dot_dimension_numbers<[1], [0], [0], [1], [0, 0, 1, 1], [], []>} : vector<8x72xf32>, vector<72x256xf32>, vector<8x256xf32> -> vector<8x256xf32>
    %c0_34 = arith.constant 0 : index
    %c0_35 = arith.constant 0 : index
    %c0_36 = arith.constant 0 : index
    %84 = vector.load %arg13[%c0_34, %c0_35, %c0_36] : memref<1x8x1xf32, #tpu.memory_space<vmem>>, vector<1x8x1xf32>
    %85 = vector.shape_cast %84 : vector<1x8x1xf32> to vector<8x1xf32>
    %86 = vector.broadcast %85 : vector<8x1xf32> to vector<8x256xf32>
    %87 = arith.addf %83, %86 : vector<8x256xf32>
    %88 = arith.negf %87 : vector<8x256xf32>
    %89 = math.exp %88 : vector<8x256xf32>
    %cst_37 = arith.constant 1.000000e+00 : f32
    %90 = vector.broadcast %cst_37 : f32 to vector<8x256xf32>
    %91 = arith.addf %90, %89 : vector<8x256xf32>
    %92 = arith.divf %90, %91 : vector<8x256xf32>
    %93 = arith.mulf %87, %92 : vector<8x256xf32>
    %94 = arith.addf %15, %93 : vector<8x256xf32>
    %95 = vector.extract_strided_slice %94 {offsets = [0, 16], sizes = [8, 128], strides = [1, 1]} : vector<8x256xf32> to vector<8x128xf32>
    %c0_38 = arith.constant 0 : index
    %c0_39 = arith.constant 0 : index
    %96 = vector.load %arg14[%c0_38, %c0_39] : memref<8x8xf32, #tpu.memory_space<vmem>>, vector<8x8xf32>
    %cst_40 = arith.constant dense<0.000000e+00> : vector<8x128xf32>
    %97 = tpu.matmul %96, %95, %cst_40 {dimension_numbers = #tpu.dot_dimension_numbers<[1], [0], [0], [1], [0, 0, 1, 1], [], []>} : vector<8x8xf32>, vector<8x128xf32>, vector<8x128xf32> -> vector<8x128xf32>
    %c0_41 = arith.constant 0 : index
    %c0_42 = arith.constant 0 : index
    %98 = vector.load %arg15[%c0_41, %c0_42] : memref<8x1xf32, #tpu.memory_space<vmem>>, vector<8x1xf32>
    %99 = vector.broadcast %98 : vector<8x1xf32> to vector<8x128xf32>
    %100 = arith.addf %97, %99 : vector<8x128xf32>
    %101 = arith.negf %100 : vector<8x128xf32>
    %102 = math.exp %101 : vector<8x128xf32>
    %cst_43 = arith.constant 1.000000e+00 : f32
    %103 = vector.broadcast %cst_43 : f32 to vector<8x128xf32>
    %104 = arith.addf %103, %102 : vector<8x128xf32>
    %105 = arith.divf %103, %104 : vector<8x128xf32>
    %106 = arith.mulf %100, %105 : vector<8x128xf32>
    %c0_44 = arith.constant 0 : index
    %c0_45 = arith.constant 0 : index
    %107 = vector.load %arg16[%c0_44, %c0_45] : memref<16x8xf32, #tpu.memory_space<vmem>>, vector<16x8xf32>
    %cst_46 = arith.constant dense<0.000000e+00> : vector<16x128xf32>
    %108 = tpu.matmul %107, %106, %cst_46 {dimension_numbers = #tpu.dot_dimension_numbers<[1], [0], [0], [1], [0, 0, 1, 1], [], []>} : vector<16x8xf32>, vector<8x128xf32>, vector<16x128xf32> -> vector<16x128xf32>
    %109 = arith.addf %108, %29 : vector<16x128xf32>
    %c0_47 = arith.constant 0 : index
    %c0_48 = arith.constant 0 : index
    %110 = vector.load %arg17[%c0_47, %c0_48] : memref<16x1xf32, #tpu.memory_space<vmem>>, vector<16x1xf32>
    %111 = vector.broadcast %110 : vector<16x1xf32> to vector<16x128xf32>
    %112 = arith.addf %109, %111 : vector<16x128xf32>
    %113 = arith.negf %112 : vector<16x128xf32>
    %114 = math.exp %113 : vector<16x128xf32>
    %cst_49 = arith.constant 1.000000e+00 : f32
    %115 = vector.broadcast %cst_49 : f32 to vector<16x128xf32>
    %116 = arith.addf %115, %114 : vector<16x128xf32>
    %117 = arith.divf %115, %116 : vector<16x128xf32>
    %118 = arith.mulf %112, %117 : vector<16x128xf32>
    %c0_50 = arith.constant 0 : index
    %c0_51 = arith.constant 0 : index
    %c0_52 = arith.constant 0 : index
    %119 = vector.load %arg18[%c0_50, %c0_51, %c0_52] : memref<1x16x128xf32, #tpu.memory_space<vmem>>, vector<1x16x128xf32>
    %120 = vector.shape_cast %119 : vector<1x16x128xf32> to vector<16x128xf32>
    %121 = vector.shape_cast %118 : vector<16x128xf32> to vector<1x16x128xf32>
    tpu.vector_store %arg18[%c0_50, %c0_51, %c0_52], %121 {strides = array<i32>} : memref<1x16x128xf32, #tpu.memory_space<vmem>>, vector<1x16x128xf32>,
    return
  }
  func.func @transform_0(%arg0: i32, %arg1: i32) -> (i32, i32, i32, i32) {
    %c0_i32 = arith.constant 0 : i32
    %c0_i32_0 = arith.constant 0 : i32
    %c0_i32_1 = arith.constant 0 : i32
    return %arg0, %arg1, %c0_i32, %c0_i32_0 : i32, i32, i32, i32
  }
  func.func @transform_1(%arg0: i32, %arg1: i32) -> (i32, i32, i32) {
    %c0_i32 = arith.constant 0 : i32
    %c0_i32_0 = arith.constant 0 : i32
    %c0_i32_1 = arith.constant 0 : i32
    return %arg1, %c0_i32, %c0_i32_0 : i32, i32, i32
  }
  func.func @transform_2(%arg0: i32, %arg1: i32) -> (i32, i32) {
    %c0_i32 = arith.constant 0 : i32
    %c0_i32_0 = arith.constant 0 : i32
    %c0_i32_1 = arith.constant 0 : i32
    return %c0_i32, %c0_i32_0 : i32, i32
  }
  func.func @transform_3(%arg0: i32, %arg1: i32) -> (i32, i32) {
    %c0_i32 = arith.constant 0 : i32
    %c0_i32_0 = arith.constant 0 : i32
    %c0_i32_1 = arith.constant 0 : i32
    return %c0_i32, %c0_i32_0 : i32, i32
  }
  func.func @transform_4(%arg0: i32, %arg1: i32) -> (i32, i32) {
    %c0_i32 = arith.constant 0 : i32
    %c0_i32_0 = arith.constant 0 : i32
    %c0_i32_1 = arith.constant 0 : i32
    return %c0_i32, %c0_i32_0 : i32, i32
  }
  func.func @transform_5(%arg0: i32, %arg1: i32) -> (i32, i32) {
    %c0_i32 = arith.constant 0 : i32
    %c0_i32_0 = arith.constant 0 : i32
    %c0_i32_1 = arith.constant 0 : i32
    return %c0_i32, %c0_i32_0 : i32, i32
  }
  func.func @transform_6(%arg0: i32, %arg1: i32) -> (i32, i32) {
    %c0_i32 = arith.constant 0 : i32
    %c0_i32_0 = arith.constant 0 : i32
    %c0_i32_1 = arith.constant 0 : i32
    return %c0_i32, %c0_i32_0 : i32, i32
  }
  func.func @transform_7(%arg0: i32, %arg1: i32) -> (i32, i32) {
    %c0_i32 = arith.constant 0 : i32
    %c0_i32_0 = arith.constant 0 : i32
    %c0_i32_1 = arith.constant 0 : i32
    return %c0_i32, %c0_i32_0 : i32, i32
  }
  func.func @transform_8(%arg0: i32, %arg1: i32) -> (i32, i32, i32) {
    %c0_i32 = arith.constant 0 : i32
    %c0_i32_0 = arith.constant 0 : i32
    %c0_i32_1 = arith.constant 0 : i32
    %c0_i32_2 = arith.constant 0 : i32
    return %c0_i32, %c0_i32_0, %c0_i32_1 : i32, i32, i32
  }
  func.func @transform_9(%arg0: i32, %arg1: i32) -> (i32, i32, i32) {
    %c0_i32 = arith.constant 0 : i32
    %c0_i32_0 = arith.constant 0 : i32
    %c0_i32_1 = arith.constant 0 : i32
    %c0_i32_2 = arith.constant 0 : i32
    return %c0_i32, %c0_i32_0, %c0_i32_1 : i32, i32, i32
  }
  func.func @transform_10(%arg0: i32, %arg1: i32) -> (i32, i32, i32) {
    %c0_i32 = arith.constant 0 : i32
    %c0_i32_0 = arith.constant 0 : i32
    %c0_i32_1 = arith.constant 0 : i32
    %c0_i32_2 = arith.constant 0 : i32
    return %c0_i32, %c0_i32_0, %c0_i32_1 : i32, i32, i32
  }
  func.func @transform_11(%arg0: i32, %arg1: i32) -> (i32, i32, i32) {
    %c0_i32 = arith.constant 0 : i32
    %c0_i32_0 = arith.constant 0 : i32
    %c0_i32_1 = arith.constant 0 : i32
    %c0_i32_2 = arith.constant 0 : i32
    return %c0_i32, %c0_i32_0, %c0_i32_1 : i32, i32, i32
  }
  func.func @transform_12(%arg0: i32, %arg1: i32) -> (i32, i32) {
    %c0_i32 = arith.constant 0 : i32
    %c0_i32_0 = arith.constant 0 : i32
    %c0_i32_1 = arith.constant 0 : i32
    return %c0_i32, %c0_i32_0 : i32, i32
  }
  func.func @transform_13(%arg0: i32, %arg1: i32) -> (i32, i32) {
    %c0_i32 = arith.constant 0 : i32
    %c0_i32_0 = arith.constant 0 : i32
    %c0_i32_1 = arith.constant 0 : i32
    return %c0_i32, %c0_i32_0 : i32, i32
  }
  func.func @transform_14(%arg0: i32, %arg1: i32) -> (i32, i32) {
    %c0_i32 = arith.constant 0 : i32
    %c0_i32_0 = arith.constant 0 : i32
    %c0_i32_1 = arith.constant 0 : i32
    return %c0_i32, %c0_i32_0 : i32, i32
  }
  func.func @transform_15(%arg0: i32, %arg1: i32) -> (i32, i32) {
    %c0_i32 = arith.constant 0 : i32
    %c0_i32_0 = arith.constant 0 : i32
    %c0_i32_1 = arith.constant 0 : i32
    return %c0_i32, %c0_i32_0 : i32, i32
  }
  func.func @transform_16(%arg0: i32, %arg1: i32) -> (i32, i32, i32) {
    %c0_i32 = arith.constant 0 : i32
    %c0_i32_0 = arith.constant 0 : i32
    return %arg0, %c0_i32, %arg1 : i32, i32, i32
  }
}

module attributes {stable_mosaic.version = 11 : i64} {
  func.func @_csp_kernel(%arg0: i32, %arg1: i32, %arg2: memref<1x1x16x256xf32, #tpu.memory_space<vmem>>, %arg3: memref<1x1x256xf32, #tpu.memory_space<vmem>>, %arg4: memref<3x256xf32, #tpu.memory_space<vmem>>, %arg5: memref<8x16xf32, #tpu.memory_space<vmem>>, %arg6: memref<8x1xf32, #tpu.memory_space<vmem>>, %arg7: memref<8x16xf32, #tpu.memory_space<vmem>>, %arg8: memref<8x1xf32, #tpu.memory_space<vmem>>, %arg9: memref<16x8xf32, #tpu.memory_space<vmem>>, %arg10: memref<1x8x8xf32, #tpu.memory_space<vmem>>, %arg11: memref<1x8x1xf32, #tpu.memory_space<vmem>>, %arg12: memref<1x8x72xf32, #tpu.memory_space<vmem>>, %arg13: memref<1x8x1xf32, #tpu.memory_space<vmem>>, %arg14: memref<8x8xf32, #tpu.memory_space<vmem>>, %arg15: memref<8x1xf32, #tpu.memory_space<vmem>>, %arg16: memref<16x8xf32, #tpu.memory_space<vmem>>, %arg17: memref<16x1xf32, #tpu.memory_space<vmem>>, %arg18: memref<1x16x128xf32, #tpu.memory_space<vmem>>) attributes {dimension_semantics = [#tpu.dimension_semantics<parallel>, #tpu.dimension_semantics<parallel>], iteration_bounds = array<i64: 2, 2>, scalar_prefetch = 0 : i64, scratch_operands = 0 : i64, tpu.core_type = #tpu.core_type<tc>, window_params = [{transform_indices = @transform_0, window_bounds = array<i64: 1, 1, 16, 256>}, {transform_indices = @transform_1, window_bounds = array<i64: 1, 1, 256>}, {pipeline_mode = #tpu.pipeline_mode<synchronous>, transform_indices = @transform_2, window_bounds = array<i64: 3, 256>}, {pipeline_mode = #tpu.pipeline_mode<synchronous>, transform_indices = @transform_3, window_bounds = array<i64: 8, 16>}, {pipeline_mode = #tpu.pipeline_mode<synchronous>, transform_indices = @transform_4, window_bounds = array<i64: 8, 1>}, {pipeline_mode = #tpu.pipeline_mode<synchronous>, transform_indices = @transform_5, window_bounds = array<i64: 8, 16>}, {pipeline_mode = #tpu.pipeline_mode<synchronous>, transform_indices = @transform_6, window_bounds = array<i64: 8, 1>}, {pipeline_mode = #tpu.pipeline_mode<synchronous>, transform_indices = @transform_7, window_bounds = array<i64: 16, 8>}, {pipeline_mode = #tpu.pipeline_mode<synchronous>, transform_indices = @transform_8, window_bounds = array<i64: 1, 8, 8>}, {pipeline_mode = #tpu.pipeline_mode<synchronous>, transform_indices = @transform_9, window_bounds = array<i64: 1, 8, 1>}, {pipeline_mode = #tpu.pipeline_mode<synchronous>, transform_indices = @transform_10, window_bounds = array<i64: 1, 8, 72>}, {pipeline_mode = #tpu.pipeline_mode<synchronous>, transform_indices = @transform_11, window_bounds = array<i64: 1, 8, 1>}, {pipeline_mode = #tpu.pipeline_mode<synchronous>, transform_indices = @transform_12, window_bounds = array<i64: 8, 8>}, {pipeline_mode = #tpu.pipeline_mode<synchronous>, transform_indices = @transform_13, window_bounds = array<i64: 8, 1>}, {pipeline_mode = #tpu.pipeline_mode<synchronous>, transform_indices = @transform_14, window_bounds = array<i64: 16, 8>}, {pipeline_mode = #tpu.pipeline_mode<synchronous>, transform_indices = @transform_15, window_bounds = array<i64: 16, 1>}, {transform_indices = @transform_16, window_bounds = array<i64: 1, 16, 128>}]} {
    %c0 = arith.constant 0 : index
    %c0_0 = arith.constant 0 : index
    %c0_1 = arith.constant 0 : index
    %c0_2 = arith.constant 0 : index
    %0 = vector.load %arg2[%c0, %c0_0, %c0_1, %c0_2] : memref<1x1x16x256xf32, #tpu.memory_space<vmem>>, vector<1x1x16x256xf32>
    %1 = vector.shape_cast %0 : vector<1x1x16x256xf32> to vector<16x256xf32>
    %c0_3 = arith.constant 0 : index
    %c0_4 = arith.constant 0 : index
    %c0_5 = arith.constant 0 : index
    %2 = vector.load %arg3[%c0_3, %c0_4, %c0_5] : memref<1x1x256xf32, #tpu.memory_space<vmem>>, vector<1x1x256xf32>
    %3 = vector.shape_cast %2 : vector<1x1x256xf32> to vector<1x256xf32>
    %c0_6 = arith.constant 0 : index
    %c0_7 = arith.constant 0 : index
    %4 = vector.load %arg4[%c0_6, %c0_7] : memref<3x256xf32, #tpu.memory_space<vmem>>, vector<3x256xf32>
    %c0_8 = arith.constant 0 : index
    %c0_9 = arith.constant 0 : index
    %5 = vector.load %arg5[%c0_8, %c0_9] : memref<8x16xf32, #tpu.memory_space<vmem>>, vector<8x16xf32>
    %cst = arith.constant dense<0.000000e+00> : vector<8x256xf32>
    %6 = tpu.matmul %5, %1, %cst {dimension_numbers = #tpu.dot_dimension_numbers<[1], [0], [0], [1], [0, 0, 1, 1], [], []>} : vector<8x16xf32>, vector<16x256xf32>, vector<8x256xf32> -> vector<8x256xf32>
    %c0_10 = arith.constant 0 : index
    %c0_11 = arith.constant 0 : index
    %7 = vector.load %arg6[%c0_10, %c0_11] : memref<8x1xf32, #tpu.memory_space<vmem>>, vector<8x1xf32>
    %8 = vector.broadcast %7 : vector<8x1xf32> to vector<8x256xf32>
    %9 = arith.addf %6, %8 : vector<8x256xf32>
    %10 = arith.negf %9 : vector<8x256xf32>
    %11 = math.exp %10 : vector<8x256xf32>
    %cst_12 = arith.constant 1.000000e+00 : f32
    %12 = vector.broadcast %cst_12 : f32 to vector<8x256xf32>
    %13 = arith.addf %12, %11 : vector<8x256xf32>
    %14 = arith.divf %12, %13 : vector<8x256xf32>
    %15 = arith.mulf %9, %14 : vector<8x256xf32>
    %16 = vector.extract_strided_slice %1 {offsets = [0, 16], sizes = [16, 128], strides = [1, 1]} : vector<16x256xf32> to vector<16x128xf32>
    %c0_13 = arith.constant 0 : index
    %c0_14 = arith.constant 0 : index
    %17 = vector.load %arg7[%c0_13, %c0_14] : memref<8x16xf32, #tpu.memory_space<vmem>>, vector<8x16xf32>
    %cst_15 = arith.constant dense<0.000000e+00> : vector<8x128xf32>
    %18 = tpu.matmul %17, %16, %cst_15 {dimension_numbers = #tpu.dot_dimension_numbers<[1], [0], [0], [1], [0, 0, 1, 1], [], []>} : vector<8x16xf32>, vector<16x128xf32>, vector<8x128xf32> -> vector<8x128xf32>
    %c0_16 = arith.constant 0 : index
    %c0_17 = arith.constant 0 : index
    %19 = vector.load %arg8[%c0_16, %c0_17] : memref<8x1xf32, #tpu.memory_space<vmem>>, vector<8x1xf32>
    %20 = vector.broadcast %19 : vector<8x1xf32> to vector<8x128xf32>
    %21 = arith.addf %18, %20 : vector<8x128xf32>
    %22 = arith.negf %21 : vector<8x128xf32>
    %23 = math.exp %22 : vector<8x128xf32>
    %cst_18 = arith.constant 1.000000e+00 : f32
    %24 = vector.broadcast %cst_18 : f32 to vector<8x128xf32>
    %25 = arith.addf %24, %23 : vector<8x128xf32>
    %26 = arith.divf %24, %25 : vector<8x128xf32>
    %27 = arith.mulf %21, %26 : vector<8x128xf32>
    %c0_19 = arith.constant 0 : index
    %c0_20 = arith.constant 0 : index
    %28 = vector.load %arg9[%c0_19, %c0_20] : memref<16x8xf32, #tpu.memory_space<vmem>>, vector<16x8xf32>
    %cst_21 = arith.constant dense<0.000000e+00> : vector<16x128xf32>
    %29 = tpu.matmul %28, %27, %cst_21 {dimension_numbers = #tpu.dot_dimension_numbers<[1], [0], [0], [1], [0, 0, 1, 1], [], []>} : vector<16x8xf32>, vector<8x128xf32>, vector<16x128xf32> -> vector<16x128xf32>
    %c0_22 = arith.constant 0 : index
    %c0_23 = arith.constant 0 : index
    %c0_24 = arith.constant 0 : index
    %30 = vector.load %arg10[%c0_22, %c0_23, %c0_24] : memref<1x8x8xf32, #tpu.memory_space<vmem>>, vector<1x8x8xf32>
    %31 = vector.shape_cast %30 : vector<1x8x8xf32> to vector<8x8xf32>
    %cst_25 = arith.constant dense<0.000000e+00> : vector<8x256xf32>
    %32 = tpu.matmul %31, %15, %cst_25 {dimension_numbers = #tpu.dot_dimension_numbers<[1], [0], [0], [1], [0, 0, 1, 1], [], []>} : vector<8x8xf32>, vector<8x256xf32>, vector<8x256xf32> -> vector<8x256xf32>
    %c0_26 = arith.constant 0 : index
    %c0_27 = arith.constant 0 : index
    %c0_28 = arith.constant 0 : index
    %33 = vector.load %arg11[%c0_26, %c0_27, %c0_28] : memref<1x8x1xf32, #tpu.memory_space<vmem>>, vector<1x8x1xf32>
    %34 = vector.shape_cast %33 : vector<1x8x1xf32> to vector<8x1xf32>
    %35 = vector.broadcast %34 : vector<8x1xf32> to vector<8x256xf32>
    %36 = arith.addf %32, %35 : vector<8x256xf32>
    %37 = arith.negf %36 : vector<8x256xf32>
    %38 = math.exp %37 : vector<8x256xf32>
    %cst_29 = arith.constant 1.000000e+00 : f32
    %39 = vector.broadcast %cst_29 : f32 to vector<8x256xf32>
    %40 = arith.addf %39, %38 : vector<8x256xf32>
    %41 = arith.divf %39, %40 : vector<8x256xf32>
    %42 = arith.mulf %36, %41 : vector<8x256xf32>
    %43 = vector.broadcast %3 : vector<1x256xf32> to vector<8x256xf32>
    %44 = arith.mulf %42, %43 : vector<8x256xf32>
    %c17_i32 = arith.constant 17 : i32
    %45 = tpu.dynamic_rotate %44 by %c17_i32 dim 1 : vector<8x256xf32>, i32 -> vector<8x256xf32>
    %46 = vector.extract_strided_slice %4 {offsets = [0, 0], sizes = [1, 256], strides = [1, 1]} : vector<3x256xf32> to vector<1x256xf32>
    %47 = vector.broadcast %46 : vector<1x256xf32> to vector<8x256xf32>
    %48 = arith.mulf %45, %47 : vector<8x256xf32>
    %c16_i32 = arith.constant 16 : i32
    %49 = tpu.dynamic_rotate %44 by %c16_i32 dim 1 : vector<8x256xf32>, i32 -> vector<8x256xf32>
    %50 = vector.extract_strided_slice %4 {offsets = [1, 0], sizes = [1, 256], strides = [1, 1]} : vector<3x256xf32> to vector<1x256xf32>
    %51 = vector.broadcast %50 : vector<1x256xf32> to vector<8x256xf32>
    %52 = arith.mulf %49, %51 : vector<8x256xf32>
    %c15_i32 = arith.constant 15 : i32
    %53 = tpu.dynamic_rotate %44 by %c15_i32 dim 1 : vector<8x256xf32>, i32 -> vector<8x256xf32>
    %54 = vector.extract_strided_slice %4 {offsets = [2, 0], sizes = [1, 256], strides = [1, 1]} : vector<3x256xf32> to vector<1x256xf32>
    %55 = vector.broadcast %54 : vector<1x256xf32> to vector<8x256xf32>
    %56 = arith.mulf %53, %55 : vector<8x256xf32>
    %c1_i32 = arith.constant 1 : i32
    %57 = tpu.dynamic_rotate %44 by %c1_i32 dim 1 : vector<8x256xf32>, i32 -> vector<8x256xf32>
    %58 = vector.extract_strided_slice %4 {offsets = [0, 0], sizes = [1, 256], strides = [1, 1]} : vector<3x256xf32> to vector<1x256xf32>
    %59 = vector.broadcast %58 : vector<1x256xf32> to vector<8x256xf32>
    %60 = arith.mulf %57, %59 : vector<8x256xf32>
    %61 = vector.extract_strided_slice %4 {offsets = [1, 0], sizes = [1, 256], strides = [1, 1]} : vector<3x256xf32> to vector<1x256xf32>
    %62 = vector.broadcast %61 : vector<1x256xf32> to vector<8x256xf32>
    %63 = arith.mulf %44, %62 : vector<8x256xf32>
    %c255_i32 = arith.constant 255 : i32
    %64 = tpu.dynamic_rotate %44 by %c255_i32 dim 1 : vector<8x256xf32>, i32 -> vector<8x256xf32>
    %65 = vector.extract_strided_slice %4 {offsets = [2, 0], sizes = [1, 256], strides = [1, 1]} : vector<3x256xf32> to vector<1x256xf32>
    %66 = vector.broadcast %65 : vector<1x256xf32> to vector<8x256xf32>
    %67 = arith.mulf %64, %66 : vector<8x256xf32>
    %c241_i32 = arith.constant 241 : i32
    %68 = tpu.dynamic_rotate %44 by %c241_i32 dim 1 : vector<8x256xf32>, i32 -> vector<8x256xf32>
    %69 = vector.extract_strided_slice %4 {offsets = [0, 0], sizes = [1, 256], strides = [1, 1]} : vector<3x256xf32> to vector<1x256xf32>
    %70 = vector.broadcast %69 : vector<1x256xf32> to vector<8x256xf32>
    %71 = arith.mulf %68, %70 : vector<8x256xf32>
    %c240_i32 = arith.constant 240 : i32
    %72 = tpu.dynamic_rotate %44 by %c240_i32 dim 1 : vector<8x256xf32>, i32 -> vector<8x256xf32>
    %73 = vector.extract_strided_slice %4 {offsets = [1, 0], sizes = [1, 256], strides = [1, 1]} : vector<3x256xf32> to vector<1x256xf32>
    %74 = vector.broadcast %73 : vector<1x256xf32> to vector<8x256xf32>
    %75 = arith.mulf %72, %74 : vector<8x256xf32>
    %c239_i32 = arith.constant 239 : i32
    %76 = tpu.dynamic_rotate %44 by %c239_i32 dim 1 : vector<8x256xf32>, i32 -> vector<8x256xf32>
    %77 = vector.extract_strided_slice %4 {offsets = [2, 0], sizes = [1, 256], strides = [1, 1]} : vector<3x256xf32> to vector<1x256xf32>
    %78 = vector.broadcast %77 : vector<1x256xf32> to vector<8x256xf32>
    %79 = arith.mulf %76, %78 : vector<8x256xf32>
    %80 = tpu.concatenate %48, %52, %56, %60, %63, %67, %71, %75, %79 in 0 : vector<8x256xf32>, vector<8x256xf32>, vector<8x256xf32>, vector<8x256xf32>, vector<8x256xf32>, vector<8x256xf32>, vector<8x256xf32>, vector<8x256xf32>, vector<8x256xf32> -> vector<72x256xf32>
    %c0_30 = arith.constant 0 : index
    %c0_31 = arith.constant 0 : index
    %c0_32 = arith.constant 0 : index
    %81 = vector.load %arg12[%c0_30, %c0_31, %c0_32] : memref<1x8x72xf32, #tpu.memory_space<vmem>>, vector<1x8x72xf32>
    %82 = vector.shape_cast %81 : vector<1x8x72xf32> to vector<8x72xf32>
    %cst_33 = arith.constant dense<0.000000e+00> : vector<8x256xf32>
    %83 = tpu.matmul %82, %80, %cst_33 {dimension_numbers = #tpu.dot_dimension_numbers<[1], [0], [0], [1], [0, 0, 1, 1], [], []>} : vector<8x72xf32>, vector<72x256xf32>, vector<8x256xf32> -> vector<8x256xf32>
    %c0_34 = arith.constant 0 : index
    %c0_35 = arith.constant 0 : index
    %c0_36 = arith.constant 0 : index
    %84 = vector.load %arg13[%c0_34, %c0_35, %c0_36] : memref<1x8x1xf32, #tpu.memory_space<vmem>>, vector<1x8x1xf32>
    %85 = vector.shape_cast %84 : vector<1x8x1xf32> to vector<8x1xf32>
    %86 = vector.broadcast %85 : vector<8x1xf32> to vector<8x256xf32>
    %87 = arith.addf %83, %86 : vector<8x256xf32>
    %88 = arith.negf %87 : vector<8x256xf32>
    %89 = math.exp %88 : vector<8x256xf32>
    %cst_37 = arith.constant 1.000000e+00 : f32
    %90 = vector.broadcast %cst_37 : f32 to vector<8x256xf32>
    %91 = arith.addf %90, %89 : vector<8x256xf32>
    %92 = arith.divf %90, %91 : vector<8x256xf32>
    %93 = arith.mulf %87, %92 : vector<8x256xf32>
    %94 = arith.addf %15, %93 : vector<8x256xf32>
    %95 = vector.extract_strided_slice %94 {offsets = [0, 16], sizes = [8, 128], strides = [1, 1]} : vector<8x256xf32> to vector<8x128xf32>
    %c0_38 = arith.constant 0 : index
    %c0_39 = arith.constant 0 : index
    %96 = vector.load %arg14[%c0_38, %c0_39] : memref<8x8xf32, #tpu.memory_space<vmem>>, vector<8x8xf32>
    %cst_40 = arith.constant dense<0.000000e+00> : vector<8x128xf32>
    %97 = tpu.matmul %96, %95, %cst_40 {dimension_numbers = #tpu.dot_dimension_numbers<[1], [0], [0], [1], [0, 0, 1, 1], [], []>} : vector<8x8xf32>, vector<8x128xf32>, vector<8x128xf32> -> vector<8x128xf32>
    %c0_41 = arith.constant 0 : index
    %c0_42 = arith.constant 0 : index
    %98 = vector.load %arg15[%c0_41, %c0_42] : memref<8x1xf32, #tpu.memory_space<vmem>>, vector<8x1xf32>
    %99 = vector.broadcast %98 : vector<8x1xf32> to vector<8x128xf32>
    %100 = arith.addf %97, %99 : vector<8x128xf32>
    %101 = arith.negf %100 : vector<8x128xf32>
    %102 = math.exp %101 : vector<8x128xf32>
    %cst_43 = arith.constant 1.000000e+00 : f32
    %103 = vector.broadcast %cst_43 : f32 to vector<8x128xf32>
    %104 = arith.addf %103, %102 : vector<8x128xf32>
    %105 = arith.divf %103, %104 : vector<8x128xf32>
    %106 = arith.mulf %100, %105 : vector<8x128xf32>
    %c0_44 = arith.constant 0 : index
    %c0_45 = arith.constant 0 : index
    %107 = vector.load %arg16[%c0_44, %c0_45] : memref<16x8xf32, #tpu.memory_space<vmem>>, vector<16x8xf32>
    %cst_46 = arith.constant dense<0.000000e+00> : vector<16x128xf32>
    %108 = tpu.matmul %107, %106, %cst_46 {dimension_numbers = #tpu.dot_dimension_numbers<[1], [0], [0], [1], [0, 0, 1, 1], [], []>} : vector<16x8xf32>, vector<8x128xf32>, vector<16x128xf32> -> vector<16x128xf32>
    %109 = arith.addf %108, %29 : vector<16x128xf32>
    %c0_47 = arith.constant 0 : index
    %c0_48 = arith.constant 0 : index
    %110 = vector.load %arg17[%c0_47, %c0_48] : memref<16x1xf32, #tpu.memory_space<vmem>>, vector<16x1xf32>
    %111 = vector.broadcast %110 : vector<16x1xf32> to vector<16x128xf32>
    %112 = arith.addf %109, %111 : vector<16x128xf32>
    %113 = arith.negf %112 : vector<16x128xf32>
    %114 = math.exp %113 : vector<16x128xf32>
    %cst_49 = arith.constant 1.000000e+00 : f32
    %115 = vector.broadcast %cst_49 : f32 to vector<16x128xf32>
    %116 = arith.addf %115, %114 : vector<16x128xf32>
    %117 = arith.divf %115, %116 : vector<16x128xf32>
    %118 = arith.mulf %112, %117 : vector<16x128xf32>
    %c0_50 = arith.constant 0 : index
    %c0_51 = arith.constant 0 : index
    %c0_52 = arith.constant 0 : index
    %119 = vector.load %arg18[%c0_50, %c0_51, %c0_52] : memref<1x16x128xf32, #tpu.memory_space<vmem>>, vector<1x16x128xf32>
    %120 = vector.shape_cast %119 : vector<1x16x128xf32> to vector<16x128xf32>
    %121 = vector.shape_cast %118 : vector<16x128xf32> to vector<1x16x128xf32>
    tpu.vector_store %arg18[%c0_50, %c0_51, %c0_52], %121 {strides = array<i32>} : memref<1x16x128xf32, #tpu.memory_space<vmem>>, vector<1x16x128xf32>,
    return
  }
  func.func @transform_0(%arg0: i32, %arg1: i32) -> (i32, i32, i32, i32) {
    %c0_i32 = arith.constant 0 : i32
    %c0_i32_0 = arith.constant 0 : i32
    %c0_i32_1 = arith.constant 0 : i32
    return %arg0, %arg1, %c0_i32, %c0_i32_0 : i32, i32, i32, i32
  }
  func.func @transform_1(%arg0: i32, %arg1: i32) -> (i32, i32, i32) {
    %c0_i32 = arith.constant 0 : i32
    %c0_i32_0 = arith.constant 0 : i32
    %c0_i32_1 = arith.constant 0 : i32
    return %arg1, %c0_i32, %c0_i32_0 : i32, i32, i32
  }
  func.func @transform_2(%arg0: i32, %arg1: i32) -> (i32, i32) {
    %c0_i32 = arith.constant 0 : i32
    %c0_i32_0 = arith.constant 0 : i32
    %c0_i32_1 = arith.constant 0 : i32
    return %c0_i32, %c0_i32_0 : i32, i32
  }
  func.func @transform_3(%arg0: i32, %arg1: i32) -> (i32, i32) {
    %c0_i32 = arith.constant 0 : i32
    %c0_i32_0 = arith.constant 0 : i32
    %c0_i32_1 = arith.constant 0 : i32
    return %c0_i32, %c0_i32_0 : i32, i32
  }
  func.func @transform_4(%arg0: i32, %arg1: i32) -> (i32, i32) {
    %c0_i32 = arith.constant 0 : i32
    %c0_i32_0 = arith.constant 0 : i32
    %c0_i32_1 = arith.constant 0 : i32
    return %c0_i32, %c0_i32_0 : i32, i32
  }
  func.func @transform_5(%arg0: i32, %arg1: i32) -> (i32, i32) {
    %c0_i32 = arith.constant 0 : i32
    %c0_i32_0 = arith.constant 0 : i32
    %c0_i32_1 = arith.constant 0 : i32
    return %c0_i32, %c0_i32_0 : i32, i32
  }
  func.func @transform_6(%arg0: i32, %arg1: i32) -> (i32, i32) {
    %c0_i32 = arith.constant 0 : i32
    %c0_i32_0 = arith.constant 0 : i32
    %c0_i32_1 = arith.constant 0 : i32
    return %c0_i32, %c0_i32_0 : i32, i32
  }
  func.func @transform_7(%arg0: i32, %arg1: i32) -> (i32, i32) {
    %c0_i32 = arith.constant 0 : i32
    %c0_i32_0 = arith.constant 0 : i32
    %c0_i32_1 = arith.constant 0 : i32
    return %c0_i32, %c0_i32_0 : i32, i32
  }
  func.func @transform_8(%arg0: i32, %arg1: i32) -> (i32, i32, i32) {
    %c0_i32 = arith.constant 0 : i32
    %c0_i32_0 = arith.constant 0 : i32
    %c0_i32_1 = arith.constant 0 : i32
    %c0_i32_2 = arith.constant 0 : i32
    return %c0_i32, %c0_i32_0, %c0_i32_1 : i32, i32, i32
  }
  func.func @transform_9(%arg0: i32, %arg1: i32) -> (i32, i32, i32) {
    %c0_i32 = arith.constant 0 : i32
    %c0_i32_0 = arith.constant 0 : i32
    %c0_i32_1 = arith.constant 0 : i32
    %c0_i32_2 = arith.constant 0 : i32
    return %c0_i32, %c0_i32_0, %c0_i32_1 : i32, i32, i32
  }
  func.func @transform_10(%arg0: i32, %arg1: i32) -> (i32, i32, i32) {
    %c0_i32 = arith.constant 0 : i32
    %c0_i32_0 = arith.constant 0 : i32
    %c0_i32_1 = arith.constant 0 : i32
    %c0_i32_2 = arith.constant 0 : i32
    return %c0_i32, %c0_i32_0, %c0_i32_1 : i32, i32, i32
  }
  func.func @transform_11(%arg0: i32, %arg1: i32) -> (i32, i32, i32) {
    %c0_i32 = arith.constant 0 : i32
    %c0_i32_0 = arith.constant 0 : i32
    %c0_i32_1 = arith.constant 0 : i32
    %c0_i32_2 = arith.constant 0 : i32
    return %c0_i32, %c0_i32_0, %c0_i32_1 : i32, i32, i32
  }
  func.func @transform_12(%arg0: i32, %arg1: i32) -> (i32, i32) {
    %c0_i32 = arith.constant 0 : i32
    %c0_i32_0 = arith.constant 0 : i32
    %c0_i32_1 = arith.constant 0 : i32
    return %c0_i32, %c0_i32_0 : i32, i32
  }
  func.func @transform_13(%arg0: i32, %arg1: i32) -> (i32, i32) {
    %c0_i32 = arith.constant 0 : i32
    %c0_i32_0 = arith.constant 0 : i32
    %c0_i32_1 = arith.constant 0 : i32
    return %c0_i32, %c0_i32_0 : i32, i32
  }
  func.func @transform_14(%arg0: i32, %arg1: i32) -> (i32, i32) {
    %c0_i32 = arith.constant 0 : i32
    %c0_i32_0 = arith.constant 0 : i32
    %c0_i32_1 = arith.constant 0 : i32
    return %c0_i32, %c0_i32_0 : i32, i32
  }
  func.func @transform_15(%arg0: i32, %arg1: i32) -> (i32, i32) {
    %c0_i32 = arith.constant 0 : i32
    %c0_i32_0 = arith.constant 0 : i32
    %c0_i32_1 = arith.constant 0 : i32
    return %c0_i32, %c0_i32_0 : i32, i32
  }
  func.func @transform_16(%arg0: i32, %arg1: i32) -> (i32, i32, i32) {
    %c0_i32 = arith.constant 0 : i32
    %c0_i32_0 = arith.constant 0 : i32
    return %arg0, %c0_i32, %arg1 : i32, i32, i32
  }
}

</mosaic_0001>

<bundles_post_ra>
// kernel: bottleneck_csp.1
= control target key start
LH: loop header
LB: loop body
LE: loop exit
PB: predicated region body
PF: predicated region fallthrough
CT: control target
= control target key end

     0   :  { %s2121_s0 = inlined_call_operand.vmem [shape: f32[2,2,16,256], index: 0, kind: input, shape index: {}]   ;;  %s2122_s1 = inlined_call_operand.vmem [shape: f32[2,1,256], index: 1, kind: input, shape index: {}]   ;;  %s2123_s2 = inlined_call_operand.vmem [shape: f32[3,256], index: 2, kind: input, shape index: {}]   ;;  %s2124_s3 = inlined_call_operand.vmem [shape: f32[8,16], index: 3, kind: input, shape index: {}]   ;;  %s2125_s4 = inlined_call_operand.vmem [shape: f32[8,1], index: 4, kind: input, shape index: {}]   ;;  %s2126_s5 = inlined_call_operand.vmem [shape: f32[8,16], index: 5, kind: input, shape index: {}]   ;;  %s2127_s6 = inlined_call_operand.vmem [shape: f32[8,1], index: 6, kind: input, shape index: {}]   ;;  %s2128_s7 = inlined_call_operand.vmem [shape: f32[16,8], index: 7, kind: input, shape index: {}]   ;;  %s2129_s8 = inlined_call_operand.vmem [shape: f32[1,8,8], index: 8, kind: input, shape index: {}]   ;;  %s2130_s9 = inlined_call_operand.vmem [shape: f32[1,8,1], index: 9, kind: input, shape index: {}]   ;;  %s2131_s10 = inlined_call_operand.vmem [shape: f32[1,8,72], index: 10, kind: input, shape index: {}]   ;;  %s2132_s11 = inlined_call_operand.vmem [shape: f32[1,8,1], index: 11, kind: input, shape index: {}]   ;;  %s2133_s12 = inlined_call_operand.vmem [shape: f32[8,8], index: 12, kind: input, shape index: {}]   ;;  %s2134_s13 = inlined_call_operand.vmem [shape: f32[8,1], index: 13, kind: input, shape index: {}]   ;;  %s2135_s14 = inlined_call_operand.vmem [shape: f32[16,8], index: 14, kind: input, shape index: {}]   ;;  %s2136_s15 = inlined_call_operand.vmem [shape: f32[16,1], index: 15, kind: input, shape index: {}]   ;;  %s2137_s16 = inlined_call_operand.vmem [shape: f32[2,16,256], index: 16, kind: output, shape index: {}]  }
   0x1   :  { %2142 = sst [smem:[#allocation8_spill]] %s2121_s0 }
   0x2   :  { %2143 = sst [smem:[#allocation9_spill]] %s2125_s4 }
   0x3   :  { %2144 = sst [smem:[#allocation10_spill]] %s2137_s16 }
   0x4   :  { %s1893_s21 = smov 0   ;;  %s1895_s22 = smov 0  }
   0x5   :  { %s1897_s23 = smov 0   ;;  %s1899_s24 = smov 0  }
   0x6   :  { %s1901_s25 = smov 0   ;;  %s1903_s26 = smov 0  }
   0x7   :  { %s1905_s27 = smov 0  }
   0x8 LB: > { %2145 = sst [smem:[#allocation3_spill]] %s1786_s25  ;;  %s35_s28 = sadd.s32 1, %s1786_s25  ;;  %s1794_s27 = sphi %s1905_s27, %s26_s27   ;;  %s1790_s26 = sphi %s1903_s26, %s2158_s26   ;;  %s1786_s25 = sphi %s1901_s25, %s2157_s25   ;;  %s1782_s24 = sphi %s1899_s24, %s2156_s24   ;;  %s1778_s23 = sphi %s1897_s23, %s2155_s23   ;;  %s1774_s22 = sphi %s1895_s22, %s2160_s22   ;;  %s1770_s21 = sphi %s1893_s21, %s2159_s21  }
   0x9   : > { %2146 = sst [smem:[#allocation4_spill]] %s1790_s26  ;;  %p36_p0 = scmp.ge.s32.totalorder %s35_s28, 2 }
   0xa   : > { %s38_s29 = sadd.s32 1, %s1790_s26  ;;  %s1528_s30 = sadd.s32 4294967295, %s1794_s27  }
   0xb   : > { %p405_p1 = scmp.ne.s32.totalorder %s1774_s22, %s1770_s21  ;;  %s2162_s28 = smov (%p36_p0, %s35_s28), 0 }
   0xc   : > { %2147 = sst [smem:[#allocation5_spill]] %s2162_s28  ;;  %s2164_s29 = smov (!%p36_p0, %s38_s29), %s1790_s26 }
   0xd   : > { %s391_s0 = ssub.s32 %s1786_s25, %s2162_s28  ;;  %p406_p2 = scmp.eq.s32.totalorder %s1528_s30, 3 }
   0xe   : > { %p40_p3 = scmp.ge.s32.totalorder %s2164_s29, 2  ;;  %p1532_p4 = scmp.ge.s32.totalorder %s1794_s27, 1 }
   0xf   : > { %p1939_p5 = por %p406_p2, %p405_p1  ;;  %p491_p6 = scmp.lt.s32.totalorder %s1794_s27, 5 }
  0x10   : > { %s2166_s29 = smov (%p40_p3, %s2164_s29), 0  ;;  %s395_s20 = sadd.s32 1, %s1774_s22 }
  0x11   : > { %2149 = sst [smem:[#allocation6_spill]] %s2166_s29  ;;  %p492_p7 = pnand %p1532_p4, %p491_p6 }
  0x12   : > { %s390_s18 = ssub.s32 %s1790_s26, %s2166_s29  ;;  %s2151_s4 = sld [smem:[#allocation9_spill]] (!%p492_p7)  ;;  %v1796_v1 = vmov (!%p492_p7), 0   ;;  %v1797_v2 = vmov (!%p492_p7), 0.0   ;;  %v567_v11 = vld [vmem:[%s2124_s3] sm:$0xff] (!%p492_p7)  ;;  %vm574_vm0 = vcmask (!%p492_p7), 130048   ;;  %v1799_v13 = vmov (!%p492_p7), 0.0|0.0  }
  0x13   : > { %s392_s19 = sor.u32 %s391_s0, %s390_s18  ;;  %495 = sbr.rel (%p492_p7) target bundleno = 1540 (0x604), region = 84  ;;  %1688 = vset.pattern.permute.xlu0 (!%p492_p7), %v1796_v1  ;;  %642 = vmatprep.mubr.f32.mxu1 (!%p492_p7), %v1797_v2  ;;  %v664_v12 = vld [vmem:[%s2127_s6] sm:$0xff] (!%p492_p7)  ;;  %vm1800_vm1 = vmmov (!%p492_p7), 0   ;;  %vm682_vm2 = vcmask (!%p492_p7), 916480   ;;  %vm769_vm3 = vcmask (!%p492_p7), 64512   ;;  %v947_v57 = vlaneseq (!%p492_p7) }
  0x14   : > { %p393_p8 = scmp.eq.s32.totalorder %s392_s19, 0  ;;  %p548_p9 = scmp.lt.s32.totalorder (!%p492_p7), %s1782_s24, 1  ;;  %1699 = vset.pattern.permute.xlu1 (!%p492_p7), %v1796_v1  ;;  %v852_v19 = vld [vmem:[%s2130_s9] sm:$0xff] (!%p492_p7)  ;;  %vm1097_vm12 = vcmask (!%p492_p7), 588800  }
  0x15   : > { %p550_p10 = scmp.lt.s32.totalorder (!%p492_p7), %s1778_s23, 1  ;;  %v663_v25 = vld [vmem:[%s2126_s5] sm:$0xff] (!%p492_p7)  ;;  %v2000_v61 = vshrl.u32 (!%p492_p7), %v947_v57, 7  ;;  %s1803_s26 = smov (!%p492_p7), 15  }
  0x16   : > { %s1950_s16 = scalar_select %p393_p8, %s1774_s22, %s395_s20  }
  0x17   : > { %v851_v40 = vld [vmem:[%s2129_s8] sm:$0xff] (!%p492_p7)  ;;  %v953_v63 = vsub.s32 (!%p492_p7), 1, %v2000_v61  ;;  %v1002_v1 = vsub.s32 (!%p492_p7), 5, %v2000_v61  ;;  %s1805_s29 = smov (!%p492_p7), 127  }
  0x18   : > { %2150 = sst [smem:[#allocation7_spill]] %s1950_s16  ;;  %v568_v0 = vld [vmem:[%s2151_s4] sm:$0xff] (!%p492_p7)  ;;  %s2152_s4 = sld [smem:[#allocation8_spill]] (!%p492_p7) }
  0x19   : > { %571 = vperm.xlu0 (!%p492_p7), %1688, %v568_v0   ;;  %s1798_s16 = smov (!%p492_p7), 112   ;;  %v2010_v0 = vld [vmem:[%s2123_s2] sm:$0x77] (!%p492_p7) }
  0x1a   : > { %s549_s0 = scalar_select %p548_p9, %s1782_s24, 1 }
  0x1b   : > { %s1960_s18 = scalar_select %p550_p10, %s1778_s23, 1 }
  0x1c   : > { %s1535_s19 = sshll.u32 %s549_s0, 3 }
  0x1d   : > { %s1534_s28 = sshll.u32 %s1960_s18, 2 }
  0x1e   : > { %s554_s20 = sadd.s32 %s1535_s19, %s1534_s28  ;;  %s1537_s19 = sshll.u32 %s1960_s18, 1 }
  0x1f   : > { %s1536_s30 = sshll.u32 %s554_s20, 3  ;;  %s1806_s28 = smov 113  }
  0x20   : > { %s556_s25 = scalar_lea.vmem %s2152_s4, %s1536_s30  ;;  %s1802_s4 = smov 16  }
  0x21   : > { %v561_v3 = vld [vmem:[%s556_s25] sm:$0xff]  ;;  %v562_v4 = vld [vmem:[%s556_s25 + $0x8] sm:$0xff]  ;;  %v564_v5 = vld [vmem:[%s556_s25 + $0x18] sm:$0xff]  ;;  %s1807_s18 = smov 111  }
  0x22   : > { %v1595_v6 = vpack.c.bf16 %v564_v5, %v562_v4  ;;  %v1689_v7 = vpack.i.bf16 %v562_v4, %v561_v3  ;;  %v563_v8 = vld [vmem:[%s556_s25 + $0x10] sm:$0xff]  ;;  %s560_s25 = scalar_lea.vmem %s2122_s1, %s1537_s19  ;;  %s1801_s19 = smov 17  }
  0x23   : > { %v1597_v9 = vpack.c.bf16 %v563_v8, %v561_v3  ;;  %v1694_v10 = vpack.i.bf16 %v564_v5, %v563_v8  ;;  %v949_v3 = vsub.s32 0, %v2000_v61  ;;  %v565_v4 = vld [vmem:[%s560_s25] sm:$0x3]  ;;  %v999_v5 = vrot.slane %v2010_v0, %v953_v63  ;;  %s1804_s25 = smov 1  }
  0x24   : > { %1596 = vmatprep.subr.bf16.mxu1 %v1595_v6  ;;  %1690 = vrot.lane.b32.xlu0 %v1689_v7, %s1798_s16  ;;  %v1003_v6 = vrot.slane %v2010_v0, %v1002_v1 }
  0x25   : > { %1598 = vmatpush1.bf16.msra.mxu1 %v1597_v9  ;;  %1695 = vrot.lane.b32.xlu1 %v1694_v10, %s1798_s16  ;;  %v950_v7 = vrot.slane %v565_v4, %v949_v3  ;;  %v954_v9 = vrot.slane %v565_v4, %v953_v63 }
  0x26   : > { %1599 = vmatprep.subr.bf16.mxu1 %v1799_v13  ;;  %v767_v13 = vld [vmem:[%s2128_s7] sm:$0xff] }
  0x27   : > { %1582 = vmatprep.mubr.msk.f32.mxu0 %vm769_vm3, %v767_v13 }
  0x28   : > { %1538 = vmatmul.mubr.msk.f32.vlgmr.msra.gmra.mrb[0].mxu1 %vm574_vm0, %v567_v11  ;;  %667 = vperm.xlu0 %1688, %v664_v12   ;;  %v2016_v12 = vrot.slane %v999_v5, %v953_v63 }
  0x29   : > { %1577 = vmatprep.mubr.msk.f32.mxu1 %vm1800_vm1, %v1797_v2  ;;  %855 = vperm.xlu1 %1699, %v852_v19  }
  0x97   : > { %v1696_v14 = vpop.permute.xlu1 %1695 }
  0x98   : > { %v572_v15 = vpop.permute.xlu0 %571  ;;  %v1698_v16 = vunpack.i.h.bf16 %v1696_v14  ;;  %v1697_v17 = vunpack.i.l.bf16 %v1696_v14 }
  0x9a   : > { %v684_v20 = vsel %vm682_vm2, %v1697_v17, %v1698_v16  ;;  %v768_v16 = vld [vmem:[%s2128_s7 + $0x8] sm:$0xff] }
  0x9c   : > { %v1691_v18 = vpop.permute.xlu0 %1690 }
  0x9d   : > { %v1693_v21 = vunpack.i.h.bf16 %v1691_v18  ;;  %v1692_v22 = vunpack.i.l.bf16 %v1691_v18 }
  0x9f   : > { %v683_v23 = vsel %vm682_vm2, %v1692_v22, %v1693_v21  ;;  %v975_v21 = vsub.s32 4, %v2000_v61  ;;  %v2041_v22 = vand.u32 127, %v947_v57 }
  0xa0   : > { %v1600_v24 = vpack.c.bf16 %v684_v20, %v683_v23  ;;  %v972_v23 = vrot.slane %v2010_v0, %v949_v3 }
  0xa1   : > { %vm965_vm4 = vcmp.lt.s32.totalorder %v2041_v22, 17  ;;  %vm993_vm5 = vcmp.lt.s32.totalorder %v2041_v22, 16  ;;  %vm1020_vm6 = vcmp.lt.s32.totalorder %v2041_v22, 15  ;;  %vm1047_vm7 = vcmp.lt.s32.totalorder %v2041_v22, 1 }
  0xa2   : > { %1601 = vmatpush3.bf16.msra.mxu1 %v1600_v24  ;;  %v976_v24 = vrot.slane %v2010_v0, %v975_v21  ;;  %vm1058_vm8 = vcmp.lt.s32.totalorder %v2041_v22, 127  ;;  %vm1067_vm9 = vcmp.lt.s32.totalorder %v2041_v22, 113  ;;  %vm1076_vm10 = vcmp.lt.s32.totalorder %v2041_v22, 112 }
  0xa3   : > { %vm1085_vm11 = vcmp.lt.s32.totalorder %v2041_v22, 111  ;;  %v1090_v22 = vld [vmem:[%s2131_s10] sm:$0xff] }
  0xa5   : > { %1578 = vmatmul.mubr.msk.f32.vlgmr.msra.gmra.mrb[2].mxu1 %vm574_vm0, %v663_v25 }
  0xa6   : > { %925 = vmatprep.mubr.f32.mxu1 %v1797_v2 }
  0xa7   : > { %v668_v41 = vpop.permute.xlu0 %667 }
  0xa8   : > { %v856_v50 = vpop.permute.xlu1 %855 }
  0xfb   : > { %v644_v26 = vpop.f32.mrb[0].mxu1 }
  0xfc   : > { %v645_v27 = vadd.f32 %v644_v26, %v572_v15  ;;  %v646_v28 = vpop.f32.mrb[1].mxu1 }
  0xfd   : > { %v647_v29 = vadd.f32 %v646_v28, %v572_v15  ;;  %v2021_v15 = vrot.slane %v1003_v6, %v953_v63  ;;  %v1029_v28 = vsub.s32 6, %v2000_v61 }
  0xfe   : > { %v1539_v30 = vmul.f32 -1.442695, %v645_v27 }
  0xff   : > { %v1540_v31 = vmul.f32 -1.442695, %v647_v29 }
 0x100   : > { %1700 = vpow2.f32 %v1539_v30  ;;  %v986_v30 = vrot.slane %v976_v24, %v949_v3 }
 0x101   : > { %1702 = vpow2.f32 %v1540_v31 }
 0x10a   : > { %v1701_v32 = vpop.eup %1700 }
 0x10b   : > { %v1703_v33 = vpop.eup %1702  ;;  %v655_v34 = vadd.f32 1.0, %v1701_v32 }
 0x10c   : > { %v656_v35 = vadd.f32 1.0, %v1703_v33 }
 0x10d   : > { %1704 = vrcp.f32 %v655_v34 }
 0x10e   : > { %1706 = vrcp.f32 %v656_v35 }
 0x117   : > { %v1705_v36 = vpop.eup %1704 }
 0x118   : > { %v1707_v37 = vpop.eup %1706  ;;  %v1989_v39 = vmul.f32 %v1705_v36, %v645_v27  ;;  %v1025_v27 = vsub.s32 2, %v2000_v61 }
 0x119   : > { %v1987_v38 = vmul.f32 %v1707_v37, %v647_v29  ;;  %v982_v29 = vrot.slane %v972_v23, %v949_v3 }
 0x11a   : > { %v1026_v37 = vrot.slane %v2010_v0, %v1025_v27 }
 0x11b   : > { %861 = vmatprep.subr.mxu1 %v1987_v38 }
 0x11c   : > { %862 = vmatpush1.msra.mxu1 %v1989_v39 }
 0x11d   : > { %1545 = vmatmul.mubr.msk.f32.vlgmr.msra.gmra.mrb[4].mxu1 %vm769_vm3, %v851_v40  ;;  %1585 = vmatprep.subr.mxu1 %v1797_v2  ;;  %v1030_v40 = vrot.slane %v2010_v0, %v1029_v28 }
 0x11e   : > { %1587 = vmatprep.mubr.msk.f32.mxu1 %vm1800_vm1, %v1797_v2 }
 0x178   : > { %v756_v42 = vpop.f32.mrb[2].mxu1 }
 0x179   : > { %v757_v43 = vadd.f32 %v756_v42, %v668_v41  ;;  %v1579_v44 = vpop.f32.mrb[3].mxu1 }
 0x17b   : > { %v1542_v45 = vmul.f32 -1.442695, %v757_v43 }
 0x17d   : > { %1708 = vpow2.f32 %v1542_v45 }
 0x187   : > { %v1709_v46 = vpop.eup %1708 }
 0x188   : > { %v763_v47 = vadd.f32 1.0, %v1709_v46 }
 0x18a   : > { %1710 = vrcp.f32 %v763_v47 }
 0x194   : > { %v1711_v48 = vpop.eup %1710 }
 0x195   : > { %v766_v49 = vmul.f32 %v1711_v48, %v757_v43 }
 0x197   : > { %1580 = vmatprep.subr.mxu0 %v766_v49 }
 0x198   : > { %1581 = vmatpush3.msra.mxu0 %v766_v49  ;;  %v1036_v49 = vrot.slane %v1026_v37, %v1025_v27 }
 0x199   : > { %1583 = vmatmul.mubr.msk.f32.vlgmr.msra.gmra.mrb[0].mxu0 %vm769_vm3, %v768_v16 }
 0x19a   : > { %1165 = vmatprep.mubr.f32.mxu0 %v1797_v2  ;;  %v1091_v2 = vld [vmem:[%s2132_s11] sm:$0xff] }
 0x1f0   : > { %v927_v51 = vpop.f32.mrb[4].mxu1 }
 0x1f1   : > { %v928_v52 = vadd.f32 %v927_v51, %v856_v50  ;;  %v929_v53 = vpop.f32.mrb[5].mxu1 }
 0x1f2   : > { %v930_v54 = vadd.f32 %v929_v53, %v856_v50  ;;  %v1040_v50 = vrot.slane %v1030_v40, %v1025_v27 }
 0x1f3   : > { %v1546_v55 = vmul.f32 -1.442695, %v928_v52 }
 0x1f4   : > { %v1547_v56 = vmul.f32 -1.442695, %v930_v54 }
 0x1f5   : > { %1712 = vpow2.f32 %v1546_v55 }
 0x1f6   : > { %1714 = vpow2.f32 %v1547_v56 }
 0x1ff   : > { %v1713_v58 = vpop.eup %1712 }
 0x200   : > { %v1715_v59 = vpop.eup %1714  ;;  %v938_v60 = vadd.f32 1.0, %v1713_v58 }
 0x201   : > { %v939_v62 = vadd.f32 1.0, %v1715_v59 }
 0x202   : > { %1716 = vrcp.f32 %v938_v60 }
 0x203   : > { %1718 = vrcp.f32 %v939_v62 }
 0x20c   : > { %v1717_v8 = vpop.eup %1716 }
 0x20d   : > { %v1719_v10 = vpop.eup %1718  ;;  %v944_v11 = vmul.f32 %v1717_v8, %v928_v52 }
 0x20e   : > { %v945_v14 = vmul.f32 %v1719_v10, %v930_v54 }
 0x20f   : > { %v957_v17 = vmul.f32 %v950_v7, %v944_v11 }
 0x210   : > { %v958_v18 = vmul.f32 %v954_v9, %v945_v14 }
 0x211   : > { %959 = vrot.lane.b32.xlu1 %v957_v17, %s1801_s19  ;;  %v2030_v19 = vmul.f32 %v2016_v12, %v957_v17 }
 0x212   : > { %961 = vrot.lane.b32.xlu0 %v958_v18, %s1801_s19  ;;  %v2033_v20 = vmul.f32 %v2021_v15, %v958_v18 }
 0x215   : > { %989 = vrot.lane.b32.xlu1 %v957_v17, %s1802_s4 }
 0x216   : > { %991 = vrot.lane.b32.xlu0 %v958_v18, %s1802_s4 }
 0x219   : > { %1016 = vrot.lane.b32.xlu1 %v957_v17, %s1803_s26 }
 0x21a   : > { %1018 = vrot.lane.b32.xlu0 %v958_v18, %s1803_s26  ;;  %s545_s26 = sand.u32 1, %s1770_s21  }
 0x21d   : > { %1043 = vrot.lane.b32.xlu1 %v957_v17, %s1804_s25 }
 0x21e   : > { %1045 = vrot.lane.b32.xlu0 %v958_v18, %s1804_s25  ;;  %s1533_s25 = sshll.u32 %s545_s26, 4 }
 0x221   : > { %1054 = vrot.lane.b32.xlu1 %v957_v17, %s1805_s29 }
 0x222   : > { %1056 = vrot.lane.b32.xlu0 %v958_v18, %s1805_s29  ;;  %s547_s29 = scalar_lea.vmem [#allocation2], %s1533_s25 }
 0x225   : > { %1063 = vrot.lane.b32.xlu1 %v957_v17, %s1806_s28 }
 0x226   : > { %1065 = vrot.lane.b32.xlu0 %v958_v18, %s1806_s28  ;;  %s1558_s28 = sshll.u32 (%p1939_p5), %s1782_s24, 2 }
 0x229   : > { %1072 = vrot.lane.b32.xlu1 %v957_v17, %s1798_s16 }
 0x22a   : > { %1074 = vrot.lane.b32.xlu0 %v958_v18, %s1798_s16 }
 0x22d   : > { %1081 = vrot.lane.b32.xlu1 %v957_v17, %s1807_s18 }
 0x22e   : > { %1083 = vrot.lane.b32.xlu0 %v958_v18, %s1807_s18  ;;  %s1404_s18 = sadd.s32 (%p1939_p5), %s1778_s23, %s1558_s28 }
 0x22f   : > { %s1559_s20 = sshll.u32 (%p1939_p5), %s1404_s18, 3 }
 0x231   : > { %1094 = vperm.xlu1 %1699, %v1091_v2  }
 0x283   : > { %v960_v25 = vpop.permute.xlu1 %959 }
 0x284   : > { %v962_v26 = vpop.permute.xlu0 %961 }
 0x285   : > { %v966_v31 = vsel %vm965_vm4, %v960_v25, %v962_v26  ;;  %v967_v32 = vsel %vm965_vm4, %v962_v26, %v960_v25 }
 0x286   : > { %v987_v41 = vmul.f32 %v982_v29, %v967_v32  ;;  %v988_v42 = vmul.f32 %v986_v30, %v966_v31 }
 0x287   : > { %v990_v33 = vpop.permute.xlu1 %989 }
 0x288   : > { %v992_v34 = vpop.permute.xlu0 %991 }
 0x289   : > { %v994_v35 = vsel %vm993_vm5, %v990_v33, %v992_v34  ;;  %v995_v36 = vsel %vm993_vm5, %v992_v34, %v990_v33 }
 0x28a   : > { %v1014_v43 = vmul.f32 %v2016_v12, %v995_v36  ;;  %v1015_v44 = vmul.f32 %v2021_v15, %v994_v35 }
 0x28b   : > { %v1017_v45 = vpop.permute.xlu1 %1016 }
 0x28c   : > { %v1604_v46 = vpack.c.bf16 %v1014_v43, %v987_v41  ;;  %v1019_v47 = vpop.permute.xlu0 %1018  ;;  %v1602_v48 = vpack.c.bf16 %v1015_v44, %v988_v42 }
 0x28d   : > { %v1021_v51 = vsel %vm1020_vm6, %v1017_v45, %v1019_v47  ;;  %v1022_v52 = vsel %vm1020_vm6, %v1019_v47, %v1017_v45 }
 0x28e   : > { %1603 = vmatprep.subr.bf16.mxu0 %v1602_v48  ;;  %v1041_v57 = vmul.f32 %v1036_v49, %v1022_v52  ;;  %v1042_v58 = vmul.f32 %v1040_v50, %v1021_v51  ;;  %v1188_v52 = vld [vmem:[%s2133_s12] sm:$0xff] }
 0x28f   : > { %1605 = vmatpush1.bf16.msra.mxu0 %v1604_v46  ;;  %v1044_v53 = vpop.permute.xlu1 %1043 }
 0x290   : > { %v1046_v54 = vpop.permute.xlu0 %1045 }
 0x291   : > { %v1048_v55 = vsel %vm1047_vm7, %v1044_v53, %v1046_v54  ;;  %v1049_v56 = vsel %vm1047_vm7, %v1046_v54, %v1044_v53  ;;  %v1283_v54 = vld [vmem:[%s2135_s14] sm:$0xff] }
 0x292   : > { %v1050_v59 = vmul.f32 %v1049_v56, %v982_v29  ;;  %v1051_v60 = vmul.f32 %v1048_v55, %v986_v30 }
 0x293   : > { %v1055_v61 = vpop.permute.xlu1 %1054 }
 0x294   : > { %v1608_v62 = vpack.c.bf16 %v1050_v59, %v1041_v57  ;;  %v1057_v63 = vpop.permute.xlu0 %1056  ;;  %v1606_v0 = vpack.c.bf16 %v1051_v60, %v1042_v58 }
 0x295   : > { %v1059_v1 = vsel %vm1058_vm8, %v1055_v61, %v1057_v63  ;;  %v1060_v3 = vsel %vm1058_vm8, %v1057_v63, %v1055_v61 }
 0x296   : > { %v1061_v4 = vmul.f32 %v1059_v1, %v1036_v49  ;;  %v1062_v5 = vmul.f32 %v1060_v3, %v1040_v50  ;;  %1607 = vmatprep.subr.bf16.mxu0 %v1606_v0  ;;  %v1284_v0 = vld [vmem:[%s2135_s14 + $0x8] sm:$0xff] }
 0x297   : > { %1609 = vmatpush1.bf16.msra.mxu0 %v1608_v62  ;;  %v1064_v6 = vpop.permute.xlu1 %1063 }
 0x298   : > { %v1612_v7 = vpack.c.bf16 %v1061_v4, %v2030_v19  ;;  %v1066_v8 = vpop.permute.xlu0 %1065  ;;  %v1610_v9 = vpack.c.bf16 %v1062_v5, %v2033_v20 }
 0x299   : > { %v1068_v10 = vsel %vm1067_vm9, %v1064_v6, %v1066_v8  ;;  %v1069_v11 = vsel %vm1067_vm9, %v1066_v8, %v1064_v6 }
 0x29a   : > { %1611 = vmatprep.subr.bf16.mxu0 %v1610_v9  ;;  %v1070_v18 = vmul.f32 %v1068_v10, %v982_v29  ;;  %v1071_v2 = vmul.f32 %v1069_v11, %v986_v30 }
 0x29b   : > { %v1073_v13 = vpop.permute.xlu1 %1072  ;;  %1613 = vmatpush1.bf16.msra.mxu0 %v1612_v7 }
 0x29c   : > { %v1075_v14 = vpop.permute.xlu0 %1074 }
 0x29d   : > { %v1077_v16 = vsel %vm1076_vm10, %v1073_v13, %v1075_v14  ;;  %v1078_v17 = vsel %vm1076_vm10, %v1075_v14, %v1073_v13 }
 0x29e   : > { %v1079_v19 = vmul.f32 %v1077_v16, %v2016_v12  ;;  %v1080_v21 = vmul.f32 %v1078_v17, %v2021_v15  ;;  %v1584_v12 = vpop.f32.mrb[0].mxu0 }
 0x29f   : > { %v1082_v23 = vpop.permute.xlu1 %1081  ;;  %v842_v15 = vpop.f32.mrb[1].mxu0 }
 0x2a0   : > { %v1616_v20 = vpack.c.bf16 %v1079_v19, %v1070_v18  ;;  %v1084_v24 = vpop.permute.xlu0 %1083  ;;  %v1614_v25 = vpack.c.bf16 %v1080_v21, %v1071_v2 }
 0x2a1   : > { %v1087_v26 = vsel %vm1085_vm11, %v1084_v24, %v1082_v23  ;;  %v1086_v27 = vsel %vm1085_vm11, %v1082_v23, %v1084_v24 }
 0x2a2   : > { %v1089_v28 = vmul.f32 %v1087_v26, %v1040_v50  ;;  %1615 = vmatprep.subr.bf16.mxu0 %v1614_v25  ;;  %v1088_v31 = vmul.f32 %v1086_v27, %v1036_v49  ;;  %v1189_v49 = vld [vmem:[%s2134_s13] sm:$0xff] }
 0x2a3   : > { %1617 = vmatpush1.bf16.msra.mxu0 %v1616_v20  ;;  %v1366_v50 = vld [vmem:[%s2136_s15] sm:$0xff] }
 0x2a4   : > { %1117 = vmatprep.subr.mxu0 %v1089_v28 }
 0x2a7   : > { %1118 = vmatpush1.msra.mxu0 %v1088_v31 }
 0x2a8   : > { %1548 = vmatmul.mubr.msk.f32.vlgmr.msra.gmra.mrb[2].mxu0 %vm1097_vm12, %v1090_v22 }
 0x2b0   : > { %v1095_v29 = vpop.permute.xlu1 %1094 }
 0x37b   : > { %v1167_v30 = vpop.f32.mrb[2].mxu0 }
 0x37c   : > { %v1168_v32 = vadd.f32 %v1167_v30, %v1095_v29  ;;  %v1169_v33 = vpop.f32.mrb[3].mxu0 }
 0x37d   : > { %v1170_v34 = vadd.f32 %v1169_v33, %v1095_v29 }
 0x37e   : > { %v1549_v35 = vmul.f32 -1.442695, %v1168_v32 }
 0x37f   : > { %v1550_v36 = vmul.f32 -1.442695, %v1170_v34 }
 0x380   : > { %1720 = vpow2.f32 %v1549_v35 }
 0x381   : > { %1722 = vpow2.f32 %v1550_v36 }
 0x38a   : > { %v1721_v37 = vpop.eup %1720 }
 0x38b   : > { %v1723_v40 = vpop.eup %1722  ;;  %v1178_v41 = vadd.f32 1.0, %v1721_v37 }
 0x38c   : > { %v1179_v42 = vadd.f32 1.0, %v1723_v40 }
 0x38d   : > { %1724 = vrcp.f32 %v1178_v41 }
 0x38e   : > { %1726 = vrcp.f32 %v1179_v42 }
 0x397   : > { %v1725_v43 = vpop.eup %1724 }
 0x398   : > { %v1727_v44 = vpop.eup %1726  ;;  %v1184_v45 = vmul.f32 %v1725_v43, %v1168_v32 }
 0x399   : > { %v1185_v46 = vmul.f32 %v1727_v44, %v1170_v34 }
 0x39a   : > { %v1186_v47 = vadd.f32 %v1184_v45, %v1989_v39  ;;  %v1367_v39 = vld [vmem:[%s2136_s15 + $0x8] sm:$0xff] }
 0x39b   : > { %v1187_v48 = vadd.f32 %v1185_v46, %v1987_v38 }
 0x39c   : > { %1197 = vrot.lane.b32.xlu0 %v1186_v47, %s1798_s16 }
 0x39d   : > { %1199 = vrot.lane.b32.xlu1 %v1187_v48, %s1798_s16  ;;  %s2153_s16 = sld [smem:[#allocation10_spill]] (%p1939_p5) }
 0x3a0   : > { %1192 = vperm.xlu0 %1688, %v1189_v49  }
 0x3a1   : > { %1370 = vperm.xlu1 %1699, %v1366_v50  }
 0x3a3   : > { %s1406_s0 = scalar_lea.vmem (%p1939_p5), %s2153_s16, %s1559_s20 }
 0x3a4   : > { %1375 = vperm.xlu0 %1688, %v1367_v39  }
 0x40e   : > { %v1198_v38 = vpop.permute.xlu0 %1197 }
 0x40f   : > { %v1200_v51 = vpop.permute.xlu1 %1199 }
 0x410   : > { %v1201_v53 = vsel %vm682_vm2, %v1198_v38, %v1200_v51 }
 0x411   : > { %1586 = vmatpush3.msra.mxu1 %v1201_v53 }
 0x412   : > { %1588 = vmatmul.mubr.msk.f32.vlgmr.msra.gmra.mrb[6].mxu1 %vm769_vm3, %v1188_v52 }
 0x413   : > { %1592 = vmatprep.mubr.msk.f32.mxu1 %vm769_vm3, %v1283_v54 }
 0x41f   : > { %v1193_v55 = vpop.permute.xlu0 %1192 }
 0x420   : > { %v1371_v7 = vpop.permute.xlu1 %1370 }
 0x423   : > { %v1376_v5 = vpop.permute.xlu0 %1375 }
 0x4e5   : > { %v1272_v56 = vpop.f32.mrb[6].mxu1 }
 0x4e6   : > { %v1273_v57 = vadd.f32 %v1272_v56, %v1193_v55  ;;  %v1589_v58 = vpop.f32.mrb[7].mxu1 }
 0x4e8   : > { %v1552_v59 = vmul.f32 -1.442695, %v1273_v57 }
 0x4ea   : > { %1728 = vpow2.f32 %v1552_v59 }
 0x4f4   : > { %v1729_v60 = vpop.eup %1728 }
 0x4f5   : > { %v1279_v61 = vadd.f32 1.0, %v1729_v60 }
 0x4f7   : > { %1730 = vrcp.f32 %v1279_v61 }
 0x501   : > { %v1731_v62 = vpop.eup %1730 }
 0x502   : > { %v1282_v63 = vmul.f32 %v1731_v62, %v1273_v57 }
 0x504   : > { %1590 = vmatprep.subr.mxu1 %v1282_v63 }
 0x505   : > { %1591 = vmatpush3.msra.mxu1 %v1282_v63 }
 0x506   : > { %1593 = vmatmul.mubr.msk.f32.vlgmr.msra.gmra.mrb[8].mxu1 %vm769_vm3, %v1284_v0 }
 0x5d9   : > { %v1594_v1 = vpop.f32.mrb[8].mxu1 }
 0x5da   : > { %v1363_v3 = vadd.f32 %v1594_v1, %v1584_v12  ;;  %v1357_v4 = vpop.f32.mrb[9].mxu1 }
 0x5db   : > { %v1358_v6 = vadd.f32 %v1357_v4, %v842_v15 }
 0x5dc   : > { %v1379_v8 = vadd.f32 %v1376_v5, %v1363_v3 }
 0x5dd   : > { %v1378_v9 = vadd.f32 %v1371_v7, %v1358_v6 }
 0x5de   : > { %v1556_v10 = vmul.f32 -1.442695, %v1379_v8 }
 0x5df   : > { %v1555_v11 = vmul.f32 -1.442695, %v1378_v9 }
 0x5e0   : > { %1732 = vpow2.f32 %v1556_v10 }
 0x5e1   : > { %1734 = vpow2.f32 %v1555_v11 }
 0x5ea   : > { %v1733_v13 = vpop.eup %1732 }
 0x5eb   : > { %v1735_v14 = vpop.eup %1734  ;;  %v1387_v16 = vadd.f32 1.0, %v1733_v13 }
 0x5ec   : > { %v1386_v17 = vadd.f32 1.0, %v1735_v14 }
 0x5ed   : > { %1736 = vrcp.f32 %v1387_v16 }
 0x5ee   : > { %1738 = vrcp.f32 %v1386_v17 }
 0x5f5   : > { %1402 = sbr.rel (!%p1939_p5) target bundleno = 1540 (0x604), region = 88 }
 0x5f7   : > { %v1737_v18 = vpop.eup %1736 }
 0x5f8   : > { %v1739_v2 = vpop.eup %1738  ;;  %v1393_v19 = vmul.f32 %v1737_v18, %v1379_v8 }
 0x5f9   : > { %v1392_v21 = vmul.f32 %v1739_v2, %v1378_v9 }
 0x5fa   : > { %1395 = vst [vmem:[%s547_s29 + $0x8] sm:$0xff] %v1393_v19 }
 0x5fb   : > { %1394 = vst [vmem:[%s547_s29] sm:$0xff] %v1392_v21 }
 0x601   : > { %v1438_v20 = vld [vmem:[%s547_s29 + $0x8] sm:$0xff] }
 0x602   : > { %v1436_v23 = vld [vmem:[%s547_s29] sm:$0xff]  ;;  %1439 = vst [vmem:[%s1406_s0 + $0x10] sm:$0xff] %v1438_v20 }
 0x603   : > { %1437 = vst [vmem:[%s1406_s0] sm:$0xff] %v1436_v23 }
 0x604 PF: > { %s26_s27 = sadd.s32 1, %s1794_s27   ;;  %s2154_s17 = sld [smem:[#allocation7_spill]] }
 0x605   : > { %p23_p11 = scmp.ge.s32.totalorder %s26_s27, 6   ;;  %s2155_s23 = sld [smem:[#allocation3_spill]] }
 0x606   : > { %s2156_s24 = sld [smem:[#allocation4_spill]]  ;;  %s2157_s25 = sld [smem:[#allocation5_spill]] }
 0x607   : > { %s2158_s26 = sld [smem:[#allocation6_spill]]  ;;  %s2159_s21 = smov %s1774_s22 }
 0x608   :  { %25 = sbr.rel (!%p23_p11) target bundleno = 8 (0x8), region = 155 }
 0x60a   : > { %s2160_s22 = smov %s2154_s17 }

// kernel: bottleneck_csp.1
= control target key start
LH: loop header
LB: loop body
LE: loop exit
PB: predicated region body
PF: predicated region fallthrough
CT: control target
= control target key end

     0   :  { %s2121_s0 = inlined_call_operand.vmem [shape: f32[2,2,16,256], index: 0, kind: input, shape index: {}]   ;;  %s2122_s1 = inlined_call_operand.vmem [shape: f32[2,1,256], index: 1, kind: input, shape index: {}]   ;;  %s2123_s2 = inlined_call_operand.vmem [shape: f32[3,256], index: 2, kind: input, shape index: {}]   ;;  %s2124_s3 = inlined_call_operand.vmem [shape: f32[8,16], index: 3, kind: input, shape index: {}]   ;;  %s2125_s4 = inlined_call_operand.vmem [shape: f32[8,1], index: 4, kind: input, shape index: {}]   ;;  %s2126_s5 = inlined_call_operand.vmem [shape: f32[8,16], index: 5, kind: input, shape index: {}]   ;;  %s2127_s6 = inlined_call_operand.vmem [shape: f32[8,1], index: 6, kind: input, shape index: {}]   ;;  %s2128_s7 = inlined_call_operand.vmem [shape: f32[16,8], index: 7, kind: input, shape index: {}]   ;;  %s2129_s8 = inlined_call_operand.vmem [shape: f32[1,8,8], index: 8, kind: input, shape index: {}]   ;;  %s2130_s9 = inlined_call_operand.vmem [shape: f32[1,8,1], index: 9, kind: input, shape index: {}]   ;;  %s2131_s10 = inlined_call_operand.vmem [shape: f32[1,8,72], index: 10, kind: input, shape index: {}]   ;;  %s2132_s11 = inlined_call_operand.vmem [shape: f32[1,8,1], index: 11, kind: input, shape index: {}]   ;;  %s2133_s12 = inlined_call_operand.vmem [shape: f32[8,8], index: 12, kind: input, shape index: {}]   ;;  %s2134_s13 = inlined_call_operand.vmem [shape: f32[8,1], index: 13, kind: input, shape index: {}]   ;;  %s2135_s14 = inlined_call_operand.vmem [shape: f32[16,8], index: 14, kind: input, shape index: {}]   ;;  %s2136_s15 = inlined_call_operand.vmem [shape: f32[16,1], index: 15, kind: input, shape index: {}]   ;;  %s2137_s16 = inlined_call_operand.vmem [shape: f32[2,16,256], index: 16, kind: output, shape index: {}]  }
   0x1   :  { %2142 = sst [smem:[#allocation8_spill]] %s2121_s0 }
   0x2   :  { %2143 = sst [smem:[#allocation9_spill]] %s2125_s4 }
   0x3   :  { %2144 = sst [smem:[#allocation10_spill]] %s2137_s16 }
   0x4   :  { %s1893_s21 = smov 0   ;;  %s1895_s22 = smov 0  }
   0x5   :  { %s1897_s23 = smov 0   ;;  %s1899_s24 = smov 0  }
   0x6   :  { %s1901_s25 = smov 0   ;;  %s1903_s26 = smov 0  }
   0x7   :  { %s1905_s27 = smov 0  }
   0x8 LB: > { %2145 = sst [smem:[#allocation3_spill]] %s1786_s25  ;;  %s35_s28 = sadd.s32 1, %s1786_s25  ;;  %s1794_s27 = sphi %s1905_s27, %s26_s27   ;;  %s1790_s26 = sphi %s1903_s26, %s2158_s26   ;;  %s1786_s25 = sphi %s1901_s25, %s2157_s25   ;;  %s1782_s24 = sphi %s1899_s24, %s2156_s24   ;;  %s1778_s23 = sphi %s1897_s23, %s2155_s23   ;;  %s1774_s22 = sphi %s1895_s22, %s2160_s22   ;;  %s1770_s21 = sphi %s1893_s21, %s2159_s21  }
   0x9   : > { %2146 = sst [smem:[#allocation4_spill]] %s1790_s26  ;;  %p36_p0 = scmp.ge.s32.totalorder %s35_s28, 2 }
   0xa   : > { %s38_s29 = sadd.s32 1, %s1790_s26  ;;  %s1528_s30 = sadd.s32 4294967295, %s1794_s27  }
   0xb   : > { %p405_p1 = scmp.ne.s32.totalorder %s1774_s22, %s1770_s21  ;;  %s2162_s28 = smov (%p36_p0, %s35_s28), 0 }
   0xc   : > { %2147 = sst [smem:[#allocation5_spill]] %s2162_s28  ;;  %s2164_s29 = smov (!%p36_p0, %s38_s29), %s1790_s26 }
   0xd   : > { %s391_s0 = ssub.s32 %s1786_s25, %s2162_s28  ;;  %p406_p2 = scmp.eq.s32.totalorder %s1528_s30, 3 }
   0xe   : > { %p40_p3 = scmp.ge.s32.totalorder %s2164_s29, 2  ;;  %p1532_p4 = scmp.ge.s32.totalorder %s1794_s27, 1 }
   0xf   : > { %p1939_p5 = por %p406_p2, %p405_p1  ;;  %p491_p6 = scmp.lt.s32.totalorder %s1794_s27, 5 }
  0x10   : > { %s2166_s29 = smov (%p40_p3, %s2164_s29), 0  ;;  %s395_s20 = sadd.s32 1, %s1774_s22 }
  0x11   : > { %2149 = sst [smem:[#allocation6_spill]] %s2166_s29  ;;  %p492_p7 = pnand %p1532_p4, %p491_p6 }
  0x12   : > { %s390_s18 = ssub.s32 %s1790_s26, %s2166_s29  ;;  %s2151_s4 = sld [smem:[#allocation9_spill]] (!%p492_p7)  ;;  %v1796_v1 = vmov (!%p492_p7), 0   ;;  %v1797_v2 = vmov (!%p492_p7), 0.0   ;;  %v567_v11 = vld [vmem:[%s2124_s3] sm:$0xff] (!%p492_p7)  ;;  %vm574_vm0 = vcmask (!%p492_p7), 130048   ;;  %v1799_v13 = vmov (!%p492_p7), 0.0|0.0  }
  0x13   : > { %s392_s19 = sor.u32 %s391_s0, %s390_s18  ;;  %495 = sbr.rel (%p492_p7) target bundleno = 1540 (0x604), region = 84  ;;  %1688 = vset.pattern.permute.xlu0 (!%p492_p7), %v1796_v1  ;;  %642 = vmatprep.mubr.f32.mxu1 (!%p492_p7), %v1797_v2  ;;  %v664_v12 = vld [vmem:[%s2127_s6] sm:$0xff] (!%p492_p7)  ;;  %vm1800_vm1 = vmmov (!%p492_p7), 0   ;;  %vm682_vm2 = vcmask (!%p492_p7), 916480   ;;  %vm769_vm3 = vcmask (!%p492_p7), 64512   ;;  %v947_v57 = vlaneseq (!%p492_p7) }
  0x14   : > { %p393_p8 = scmp.eq.s32.totalorder %s392_s19, 0  ;;  %p548_p9 = scmp.lt.s32.totalorder (!%p492_p7), %s1782_s24, 1  ;;  %1699 = vset.pattern.permute.xlu1 (!%p492_p7), %v1796_v1  ;;  %v852_v19 = vld [vmem:[%s2130_s9] sm:$0xff] (!%p492_p7)  ;;  %vm1097_vm12 = vcmask (!%p492_p7), 588800  }
  0x15   : > { %p550_p10 = scmp.lt.s32.totalorder (!%p492_p7), %s1778_s23, 1  ;;  %v663_v25 = vld [vmem:[%s2126_s5] sm:$0xff] (!%p492_p7)  ;;  %v2000_v61 = vshrl.u32 (!%p492_p7), %v947_v57, 7  ;;  %s1803_s26 = smov (!%p492_p7), 15  }
  0x16   : > { %s1950_s16 = scalar_select %p393_p8, %s1774_s22, %s395_s20  }
  0x17   : > { %v851_v40 = vld [vmem:[%s2129_s8] sm:$0xff] (!%p492_p7)  ;;  %v953_v63 = vsub.s32 (!%p492_p7), 1, %v2000_v61  ;;  %v1002_v1 = vsub.s32 (!%p492_p7), 5, %v2000_v61  ;;  %s1805_s29 = smov (!%p492_p7), 127  }
  0x18   : > { %2150 = sst [smem:[#allocation7_spill]] %s1950_s16  ;;  %v568_v0 = vld [vmem:[%s2151_s4] sm:$0xff] (!%p492_p7)  ;;  %s2152_s4 = sld [smem:[#allocation8_spill]] (!%p492_p7) }
  0x19   : > { %571 = vperm.xlu0 (!%p492_p7), %1688, %v568_v0   ;;  %s1798_s16 = smov (!%p492_p7), 112   ;;  %v2010_v0 = vld [vmem:[%s2123_s2] sm:$0x77] (!%p492_p7) }
  0x1a   : > { %s549_s0 = scalar_select %p548_p9, %s1782_s24, 1 }
  0x1b   : > { %s1960_s18 = scalar_select %p550_p10, %s1778_s23, 1 }
  0x1c   : > { %s1535_s19 = sshll.u32 %s549_s0, 3 }
  0x1d   : > { %s1534_s28 = sshll.u32 %s1960_s18, 2 }
  0x1e   : > { %s554_s20 = sadd.s32 %s1535_s19, %s1534_s28  ;;  %s1537_s19 = sshll.u32 %s1960_s18, 1 }
  0x1f   : > { %s1536_s30 = sshll.u32 %s554_s20, 3  ;;  %s1806_s28 = smov 113  }
  0x20   : > { %s556_s25 = scalar_lea.vmem %s2152_s4, %s1536_s30  ;;  %s1802_s4 = smov 16  }
  0x21   : > { %v561_v3 = vld [vmem:[%s556_s25] sm:$0xff]  ;;  %v562_v4 = vld [vmem:[%s556_s25 + $0x8] sm:$0xff]  ;;  %v564_v5 = vld [vmem:[%s556_s25 + $0x18] sm:$0xff]  ;;  %s1807_s18 = smov 111  }
  0x22   : > { %v1595_v6 = vpack.c.bf16 %v564_v5, %v562_v4  ;;  %v1689_v7 = vpack.i.bf16 %v562_v4, %v561_v3  ;;  %v563_v8 = vld [vmem:[%s556_s25 + $0x10] sm:$0xff]  ;;  %s560_s25 = scalar_lea.vmem %s2122_s1, %s1537_s19  ;;  %s1801_s19 = smov 17  }
  0x23   : > { %v1597_v9 = vpack.c.bf16 %v563_v8, %v561_v3  ;;  %v1694_v10 = vpack.i.bf16 %v564_v5, %v563_v8  ;;  %v949_v3 = vsub.s32 0, %v2000_v61  ;;  %v565_v4 = vld [vmem:[%s560_s25] sm:$0x3]  ;;  %v999_v5 = vrot.slane %v2010_v0, %v953_v63  ;;  %s1804_s25 = smov 1  }
  0x24   : > { %1596 = vmatprep.subr.bf16.mxu1 %v1595_v6  ;;  %1690 = vrot.lane.b32.xlu0 %v1689_v7, %s1798_s16  ;;  %v1003_v6 = vrot.slane %v2010_v0, %v1002_v1 }
  0x25   : > { %1598 = vmatpush1.bf16.msra.mxu1 %v1597_v9  ;;  %1695 = vrot.lane.b32.xlu1 %v1694_v10, %s1798_s16  ;;  %v950_v7 = vrot.slane %v565_v4, %v949_v3  ;;  %v954_v9 = vrot.slane %v565_v4, %v953_v63 }
  0x26   : > { %1599 = vmatprep.subr.bf16.mxu1 %v1799_v13  ;;  %v767_v13 = vld [vmem:[%s2128_s7] sm:$0xff] }
  0x27   : > { %1582 = vmatprep.mubr.msk.f32.mxu0 %vm769_vm3, %v767_v13 }
  0x28   : > { %1538 = vmatmul.mubr.msk.f32.vlgmr.msra.gmra.mrb[0].mxu1 %vm574_vm0, %v567_v11  ;;  %667 = vperm.xlu0 %1688, %v664_v12   ;;  %v2016_v12 = vrot.slane %v999_v5, %v953_v63 }
  0x29   : > { %1577 = vmatprep.mubr.msk.f32.mxu1 %vm1800_vm1, %v1797_v2  ;;  %855 = vperm.xlu1 %1699, %v852_v19  }
  0x97   : > { %v1696_v14 = vpop.permute.xlu1 %1695 }
  0x98   : > { %v572_v15 = vpop.permute.xlu0 %571  ;;  %v1698_v16 = vunpack.i.h.bf16 %v1696_v14  ;;  %v1697_v17 = vunpack.i.l.bf16 %v1696_v14 }
  0x9a   : > { %v684_v20 = vsel %vm682_vm2, %v1697_v17, %v1698_v16  ;;  %v768_v16 = vld [vmem:[%s2128_s7 + $0x8] sm:$0xff] }
  0x9c   : > { %v1691_v18 = vpop.permute.xlu0 %1690 }
  0x9d   : > { %v1693_v21 = vunpack.i.h.bf16 %v1691_v18  ;;  %v1692_v22 = vunpack.i.l.bf16 %v1691_v18 }
  0x9f   : > { %v683_v23 = vsel %vm682_vm2, %v1692_v22, %v1693_v21  ;;  %v975_v21 = vsub.s32 4, %v2000_v61  ;;  %v2041_v22 = vand.u32 127, %v947_v57 }
  0xa0   : > { %v1600_v24 = vpack.c.bf16 %v684_v20, %v683_v23  ;;  %v972_v23 = vrot.slane %v2010_v0, %v949_v3 }
  0xa1   : > { %vm965_vm4 = vcmp.lt.s32.totalorder %v2041_v22, 17  ;;  %vm993_vm5 = vcmp.lt.s32.totalorder %v2041_v22, 16  ;;  %vm1020_vm6 = vcmp.lt.s32.totalorder %v2041_v22, 15  ;;  %vm1047_vm7 = vcmp.lt.s32.totalorder %v2041_v22, 1 }
  0xa2   : > { %1601 = vmatpush3.bf16.msra.mxu1 %v1600_v24  ;;  %v976_v24 = vrot.slane %v2010_v0, %v975_v21  ;;  %vm1058_vm8 = vcmp.lt.s32.totalorder %v2041_v22, 127  ;;  %vm1067_vm9 = vcmp.lt.s32.totalorder %v2041_v22, 113  ;;  %vm1076_vm10 = vcmp.lt.s32.totalorder %v2041_v22, 112 }
  0xa3   : > { %vm1085_vm11 = vcmp.lt.s32.totalorder %v2041_v22, 111  ;;  %v1090_v22 = vld [vmem:[%s2131_s10] sm:$0xff] }
  0xa5   : > { %1578 = vmatmul.mubr.msk.f32.vlgmr.msra.gmra.mrb[2].mxu1 %vm574_vm0, %v663_v25 }
  0xa6   : > { %925 = vmatprep.mubr.f32.mxu1 %v1797_v2 }
  0xa7   : > { %v668_v41 = vpop.permute.xlu0 %667 }
  0xa8   : > { %v856_v50 = vpop.permute.xlu1 %855 }
  0xfb   : > { %v644_v26 = vpop.f32.mrb[0].mxu1 }
  0xfc   : > { %v645_v27 = vadd.f32 %v644_v26, %v572_v15  ;;  %v646_v28 = vpop.f32.mrb[1].mxu1 }
  0xfd   : > { %v647_v29 = vadd.f32 %v646_v28, %v572_v15  ;;  %v2021_v15 = vrot.slane %v1003_v6, %v953_v63  ;;  %v1029_v28 = vsub.s32 6, %v2000_v61 }
  0xfe   : > { %v1539_v30 = vmul.f32 -1.442695, %v645_v27 }
  0xff   : > { %v1540_v31 = vmul.f32 -1.442695, %v647_v29 }
 0x100   : > { %1700 = vpow2.f32 %v1539_v30  ;;  %v986_v30 = vrot.slane %v976_v24, %v949_v3 }
 0x101   : > { %1702 = vpow2.f32 %v1540_v31 }
 0x10a   : > { %v1701_v32 = vpop.eup %1700 }
 0x10b   : > { %v1703_v33 = vpop.eup %1702  ;;  %v655_v34 = vadd.f32 1.0, %v1701_v32 }
 0x10c   : > { %v656_v35 = vadd.f32 1.0, %v1703_v33 }
 0x10d   : > { %1704 = vrcp.f32 %v655_v34 }
 0x10e   : > { %1706 = vrcp.f32 %v656_v35 }
 0x117   : > { %v1705_v36 = vpop.eup %1704 }
 0x118   : > { %v1707_v37 = vpop.eup %1706  ;;  %v1989_v39 = vmul.f32 %v1705_v36, %v645_v27  ;;  %v1025_v27 = vsub.s32 2, %v2000_v61 }
 0x119   : > { %v1987_v38 = vmul.f32 %v1707_v37, %v647_v29  ;;  %v982_v29 = vrot.slane %v972_v23, %v949_v3 }
 0x11a   : > { %v1026_v37 = vrot.slane %v2010_v0, %v1025_v27 }
 0x11b   : > { %861 = vmatprep.subr.mxu1 %v1987_v38 }
 0x11c   : > { %862 = vmatpush1.msra.mxu1 %v1989_v39 }
 0x11d   : > { %1545 = vmatmul.mubr.msk.f32.vlgmr.msra.gmra.mrb[4].mxu1 %vm769_vm3, %v851_v40  ;;  %1585 = vmatprep.subr.mxu1 %v1797_v2  ;;  %v1030_v40 = vrot.slane %v2010_v0, %v1029_v28 }
 0x11e   : > { %1587 = vmatprep.mubr.msk.f32.mxu1 %vm1800_vm1, %v1797_v2 }
 0x178   : > { %v756_v42 = vpop.f32.mrb[2].mxu1 }
 0x179   : > { %v757_v43 = vadd.f32 %v756_v42, %v668_v41  ;;  %v1579_v44 = vpop.f32.mrb[3].mxu1 }
 0x17b   : > { %v1542_v45 = vmul.f32 -1.442695, %v757_v43 }
 0x17d   : > { %1708 = vpow2.f32 %v1542_v45 }
 0x187   : > { %v1709_v46 = vpop.eup %1708 }
 0x188   : > { %v763_v47 = vadd.f32 1.0, %v1709_v46 }
 0x18a   : > { %1710 = vrcp.f32 %v763_v47 }
 0x194   : > { %v1711_v48 = vpop.eup %1710 }
 0x195   : > { %v766_v49 = vmul.f32 %v1711_v48, %v757_v43 }
 0x197   : > { %1580 = vmatprep.subr.mxu0 %v766_v49 }
 0x198   : > { %1581 = vmatpush3.msra.mxu0 %v766_v49  ;;  %v1036_v49 = vrot.slane %v1026_v37, %v1025_v27 }
 0x199   : > { %1583 = vmatmul.mubr.msk.f32.vlgmr.msra.gmra.mrb[0].mxu0 %vm769_vm3, %v768_v16 }
 0x19a   : > { %1165 = vmatprep.mubr.f32.mxu0 %v1797_v2  ;;  %v1091_v2 = vld [vmem:[%s2132_s11] sm:$0xff] }
 0x1f0   : > { %v927_v51 = vpop.f32.mrb[4].mxu1 }
 0x1f1   : > { %v928_v52 = vadd.f32 %v927_v51, %v856_v50  ;;  %v929_v53 = vpop.f32.mrb[5].mxu1 }
 0x1f2   : > { %v930_v54 = vadd.f32 %v929_v53, %v856_v50  ;;  %v1040_v50 = vrot.slane %v1030_v40, %v1025_v27 }
 0x1f3   : > { %v1546_v55 = vmul.f32 -1.442695, %v928_v52 }
 0x1f4   : > { %v1547_v56 = vmul.f32 -1.442695, %v930_v54 }
 0x1f5   : > { %1712 = vpow2.f32 %v1546_v55 }
 0x1f6   : > { %1714 = vpow2.f32 %v1547_v56 }
 0x1ff   : > { %v1713_v58 = vpop.eup %1712 }
 0x200   : > { %v1715_v59 = vpop.eup %1714  ;;  %v938_v60 = vadd.f32 1.0, %v1713_v58 }
 0x201   : > { %v939_v62 = vadd.f32 1.0, %v1715_v59 }
 0x202   : > { %1716 = vrcp.f32 %v938_v60 }
 0x203   : > { %1718 = vrcp.f32 %v939_v62 }
 0x20c   : > { %v1717_v8 = vpop.eup %1716 }
 0x20d   : > { %v1719_v10 = vpop.eup %1718  ;;  %v944_v11 = vmul.f32 %v1717_v8, %v928_v52 }
 0x20e   : > { %v945_v14 = vmul.f32 %v1719_v10, %v930_v54 }
 0x20f   : > { %v957_v17 = vmul.f32 %v950_v7, %v944_v11 }
 0x210   : > { %v958_v18 = vmul.f32 %v954_v9, %v945_v14 }
 0x211   : > { %959 = vrot.lane.b32.xlu1 %v957_v17, %s1801_s19  ;;  %v2030_v19 = vmul.f32 %v2016_v12, %v957_v17 }
 0x212   : > { %961 = vrot.lane.b32.xlu0 %v958_v18, %s1801_s19  ;;  %v2033_v20 = vmul.f32 %v2021_v15, %v958_v18 }
 0x215   : > { %989 = vrot.lane.b32.xlu1 %v957_v17, %s1802_s4 }
 0x216   : > { %991 = vrot.lane.b32.xlu0 %v958_v18, %s1802_s4 }
 0x219   : > { %1016 = vrot.lane.b32.xlu1 %v957_v17, %s1803_s26 }
 0x21a   : > { %1018 = vrot.lane.b32.xlu0 %v958_v18, %s1803_s26  ;;  %s545_s26 = sand.u32 1, %s1770_s21  }
 0x21d   : > { %1043 = vrot.lane.b32.xlu1 %v957_v17, %s1804_s25 }
 0x21e   : > { %1045 = vrot.lane.b32.xlu0 %v958_v18, %s1804_s25  ;;  %s1533_s25 = sshll.u32 %s545_s26, 4 }
 0x221   : > { %1054 = vrot.lane.b32.xlu1 %v957_v17, %s1805_s29 }
 0x222   : > { %1056 = vrot.lane.b32.xlu0 %v958_v18, %s1805_s29  ;;  %s547_s29 = scalar_lea.vmem [#allocation2], %s1533_s25 }
 0x225   : > { %1063 = vrot.lane.b32.xlu1 %v957_v17, %s1806_s28 }
 0x226   : > { %1065 = vrot.lane.b32.xlu0 %v958_v18, %s1806_s28  ;;  %s1558_s28 = sshll.u32 (%p1939_p5), %s1782_s24, 2 }
 0x229   : > { %1072 = vrot.lane.b32.xlu1 %v957_v17, %s1798_s16 }
 0x22a   : > { %1074 = vrot.lane.b32.xlu0 %v958_v18, %s1798_s16 }
 0x22d   : > { %1081 = vrot.lane.b32.xlu1 %v957_v17, %s1807_s18 }
 0x22e   : > { %1083 = vrot.lane.b32.xlu0 %v958_v18, %s1807_s18  ;;  %s1404_s18 = sadd.s32 (%p1939_p5), %s1778_s23, %s1558_s28 }
 0x22f   : > { %s1559_s20 = sshll.u32 (%p1939_p5), %s1404_s18, 3 }
 0x231   : > { %1094 = vperm.xlu1 %1699, %v1091_v2  }
 0x283   : > { %v960_v25 = vpop.permute.xlu1 %959 }
 0x284   : > { %v962_v26 = vpop.permute.xlu0 %961 }
 0x285   : > { %v966_v31 = vsel %vm965_vm4, %v960_v25, %v962_v26  ;;  %v967_v32 = vsel %vm965_vm4, %v962_v26, %v960_v25 }
 0x286   : > { %v987_v41 = vmul.f32 %v982_v29, %v967_v32  ;;  %v988_v42 = vmul.f32 %v986_v30, %v966_v31 }
 0x287   : > { %v990_v33 = vpop.permute.xlu1 %989 }
 0x288   : > { %v992_v34 = vpop.permute.xlu0 %991 }
 0x289   : > { %v994_v35 = vsel %vm993_vm5, %v990_v33, %v992_v34  ;;  %v995_v36 = vsel %vm993_vm5, %v992_v34, %v990_v33 }
 0x28a   : > { %v1014_v43 = vmul.f32 %v2016_v12, %v995_v36  ;;  %v1015_v44 = vmul.f32 %v2021_v15, %v994_v35 }
 0x28b   : > { %v1017_v45 = vpop.permute.xlu1 %1016 }
 0x28c   : > { %v1604_v46 = vpack.c.bf16 %v1014_v43, %v987_v41  ;;  %v1019_v47 = vpop.permute.xlu0 %1018  ;;  %v1602_v48 = vpack.c.bf16 %v1015_v44, %v988_v42 }
 0x28d   : > { %v1021_v51 = vsel %vm1020_vm6, %v1017_v45, %v1019_v47  ;;  %v1022_v52 = vsel %vm1020_vm6, %v1019_v47, %v1017_v45 }
 0x28e   : > { %1603 = vmatprep.subr.bf16.mxu0 %v1602_v48  ;;  %v1041_v57 = vmul.f32 %v1036_v49, %v1022_v52  ;;  %v1042_v58 = vmul.f32 %v1040_v50, %v1021_v51  ;;  %v1188_v52 = vld [vmem:[%s2133_s12] sm:$0xff] }
 0x28f   : > { %1605 = vmatpush1.bf16.msra.mxu0 %v1604_v46  ;;  %v1044_v53 = vpop.permute.xlu1 %1043 }
 0x290   : > { %v1046_v54 = vpop.permute.xlu0 %1045 }
 0x291   : > { %v1048_v55 = vsel %vm1047_vm7, %v1044_v53, %v1046_v54  ;;  %v1049_v56 = vsel %vm1047_vm7, %v1046_v54, %v1044_v53  ;;  %v1283_v54 = vld [vmem:[%s2135_s14] sm:$0xff] }
 0x292   : > { %v1050_v59 = vmul.f32 %v1049_v56, %v982_v29  ;;  %v1051_v60 = vmul.f32 %v1048_v55, %v986_v30 }
 0x293   : > { %v1055_v61 = vpop.permute.xlu1 %1054 }
 0x294   : > { %v1608_v62 = vpack.c.bf16 %v1050_v59, %v1041_v57  ;;  %v1057_v63 = vpop.permute.xlu0 %1056  ;;  %v1606_v0 = vpack.c.bf16 %v1051_v60, %v1042_v58 }
 0x295   : > { %v1059_v1 = vsel %vm1058_vm8, %v1055_v61, %v1057_v63  ;;  %v1060_v3 = vsel %vm1058_vm8, %v1057_v63, %v1055_v61 }
 0x296   : > { %v1061_v4 = vmul.f32 %v1059_v1, %v1036_v49  ;;  %v1062_v5 = vmul.f32 %v1060_v3, %v1040_v50  ;;  %1607 = vmatprep.subr.bf16.mxu0 %v1606_v0  ;;  %v1284_v0 = vld [vmem:[%s2135_s14 + $0x8] sm:$0xff] }
 0x297   : > { %1609 = vmatpush1.bf16.msra.mxu0 %v1608_v62  ;;  %v1064_v6 = vpop.permute.xlu1 %1063 }
 0x298   : > { %v1612_v7 = vpack.c.bf16 %v1061_v4, %v2030_v19  ;;  %v1066_v8 = vpop.permute.xlu0 %1065  ;;  %v1610_v9 = vpack.c.bf16 %v1062_v5, %v2033_v20 }
 0x299   : > { %v1068_v10 = vsel %vm1067_vm9, %v1064_v6, %v1066_v8  ;;  %v1069_v11 = vsel %vm1067_vm9, %v1066_v8, %v1064_v6 }
 0x29a   : > { %1611 = vmatprep.subr.bf16.mxu0 %v1610_v9  ;;  %v1070_v18 = vmul.f32 %v1068_v10, %v982_v29  ;;  %v1071_v2 = vmul.f32 %v1069_v11, %v986_v30 }
 0x29b   : > { %v1073_v13 = vpop.permute.xlu1 %1072  ;;  %1613 = vmatpush1.bf16.msra.mxu0 %v1612_v7 }
 0x29c   : > { %v1075_v14 = vpop.permute.xlu0 %1074 }
 0x29d   : > { %v1077_v16 = vsel %vm1076_vm10, %v1073_v13, %v1075_v14  ;;  %v1078_v17 = vsel %vm1076_vm10, %v1075_v14, %v1073_v13 }
 0x29e   : > { %v1079_v19 = vmul.f32 %v1077_v16, %v2016_v12  ;;  %v1080_v21 = vmul.f32 %v1078_v17, %v2021_v15  ;;  %v1584_v12 = vpop.f32.mrb[0].mxu0 }
 0x29f   : > { %v1082_v23 = vpop.permute.xlu1 %1081  ;;  %v842_v15 = vpop.f32.mrb[1].mxu0 }
 0x2a0   : > { %v1616_v20 = vpack.c.bf16 %v1079_v19, %v1070_v18  ;;  %v1084_v24 = vpop.permute.xlu0 %1083  ;;  %v1614_v25 = vpack.c.bf16 %v1080_v21, %v1071_v2 }
 0x2a1   : > { %v1087_v26 = vsel %vm1085_vm11, %v1084_v24, %v1082_v23  ;;  %v1086_v27 = vsel %vm1085_vm11, %v1082_v23, %v1084_v24 }
 0x2a2   : > { %v1089_v28 = vmul.f32 %v1087_v26, %v1040_v50  ;;  %1615 = vmatprep.subr.bf16.mxu0 %v1614_v25  ;;  %v1088_v31 = vmul.f32 %v1086_v27, %v1036_v49  ;;  %v1189_v49 = vld [vmem:[%s2134_s13] sm:$0xff] }
 0x2a3   : > { %1617 = vmatpush1.bf16.msra.mxu0 %v1616_v20  ;;  %v1366_v50 = vld [vmem:[%s2136_s15] sm:$0xff] }
 0x2a4   : > { %1117 = vmatprep.subr.mxu0 %v1089_v28 }
 0x2a7   : > { %1118 = vmatpush1.msra.mxu0 %v1088_v31 }
 0x2a8   : > { %1548 = vmatmul.mubr.msk.f32.vlgmr.msra.gmra.mrb[2].mxu0 %vm1097_vm12, %v1090_v22 }
 0x2b0   : > { %v1095_v29 = vpop.permute.xlu1 %1094 }
 0x37b   : > { %v1167_v30 = vpop.f32.mrb[2].mxu0 }
 0x37c   : > { %v1168_v32 = vadd.f32 %v1167_v30, %v1095_v29  ;;  %v1169_v33 = vpop.f32.mrb[3].mxu0 }
 0x37d   : > { %v1170_v34 = vadd.f32 %v1169_v33, %v1095_v29 }
 0x37e   : > { %v1549_v35 = vmul.f32 -1.442695, %v1168_v32 }
 0x37f   : > { %v1550_v36 = vmul.f32 -1.442695, %v1170_v34 }
 0x380   : > { %1720 = vpow2.f32 %v1549_v35 }
 0x381   : > { %1722 = vpow2.f32 %v1550_v36 }
 0x38a   : > { %v1721_v37 = vpop.eup %1720 }
 0x38b   : > { %v1723_v40 = vpop.eup %1722  ;;  %v1178_v41 = vadd.f32 1.0, %v1721_v37 }
 0x38c   : > { %v1179_v42 = vadd.f32 1.0, %v1723_v40 }
 0x38d   : > { %1724 = vrcp.f32 %v1178_v41 }
 0x38e   : > { %1726 = vrcp.f32 %v1179_v42 }
 0x397   : > { %v1725_v43 = vpop.eup %1724 }
 0x398   : > { %v1727_v44 = vpop.eup %1726  ;;  %v1184_v45 = vmul.f32 %v1725_v43, %v1168_v32 }
 0x399   : > { %v1185_v46 = vmul.f32 %v1727_v44, %v1170_v34 }
 0x39a   : > { %v1186_v47 = vadd.f32 %v1184_v45, %v1989_v39  ;;  %v1367_v39 = vld [vmem:[%s2136_s15 + $0x8] sm:$0xff] }
 0x39b   : > { %v1187_v48 = vadd.f32 %v1185_v46, %v1987_v38 }
 0x39c   : > { %1197 = vrot.lane.b32.xlu0 %v1186_v47, %s1798_s16 }
 0x39d   : > { %1199 = vrot.lane.b32.xlu1 %v1187_v48, %s1798_s16  ;;  %s2153_s16 = sld [smem:[#allocation10_spill]] (%p1939_p5) }
 0x3a0   : > { %1192 = vperm.xlu0 %1688, %v1189_v49  }
 0x3a1   : > { %1370 = vperm.xlu1 %1699, %v1366_v50  }
 0x3a3   : > { %s1406_s0 = scalar_lea.vmem (%p1939_p5), %s2153_s16, %s1559_s20 }
 0x3a4   : > { %1375 = vperm.xlu0 %1688, %v1367_v39  }
 0x40e   : > { %v1198_v38 = vpop.permute.xlu0 %1197 }
 0x40f   : > { %v1200_v51 = vpop.permute.xlu1 %1199 }
 0x410   : > { %v1201_v53 = vsel %vm682_vm2, %v1198_v38, %v1200_v51 }
 0x411   : > { %1586 = vmatpush3.msra.mxu1 %v1201_v53 }
 0x412   : > { %1588 = vmatmul.mubr.msk.f32.vlgmr.msra.gmra.mrb[6].mxu1 %vm769_vm3, %v1188_v52 }
 0x413   : > { %1592 = vmatprep.mubr.msk.f32.mxu1 %vm769_vm3, %v1283_v54 }
 0x41f   : > { %v1193_v55 = vpop.permute.xlu0 %1192 }
 0x420   : > { %v1371_v7 = vpop.permute.xlu1 %1370 }
 0x423   : > { %v1376_v5 = vpop.permute.xlu0 %1375 }
 0x4e5   : > { %v1272_v56 = vpop.f32.mrb[6].mxu1 }
 0x4e6   : > { %v1273_v57 = vadd.f32 %v1272_v56, %v1193_v55  ;;  %v1589_v58 = vpop.f32.mrb[7].mxu1 }
 0x4e8   : > { %v1552_v59 = vmul.f32 -1.442695, %v1273_v57 }
 0x4ea   : > { %1728 = vpow2.f32 %v1552_v59 }
 0x4f4   : > { %v1729_v60 = vpop.eup %1728 }
 0x4f5   : > { %v1279_v61 = vadd.f32 1.0, %v1729_v60 }
 0x4f7   : > { %1730 = vrcp.f32 %v1279_v61 }
 0x501   : > { %v1731_v62 = vpop.eup %1730 }
 0x502   : > { %v1282_v63 = vmul.f32 %v1731_v62, %v1273_v57 }
 0x504   : > { %1590 = vmatprep.subr.mxu1 %v1282_v63 }
 0x505   : > { %1591 = vmatpush3.msra.mxu1 %v1282_v63 }
 0x506   : > { %1593 = vmatmul.mubr.msk.f32.vlgmr.msra.gmra.mrb[8].mxu1 %vm769_vm3, %v1284_v0 }
 0x5d9   : > { %v1594_v1 = vpop.f32.mrb[8].mxu1 }
 0x5da   : > { %v1363_v3 = vadd.f32 %v1594_v1, %v1584_v12  ;;  %v1357_v4 = vpop.f32.mrb[9].mxu1 }
 0x5db   : > { %v1358_v6 = vadd.f32 %v1357_v4, %v842_v15 }
 0x5dc   : > { %v1379_v8 = vadd.f32 %v1376_v5, %v1363_v3 }
 0x5dd   : > { %v1378_v9 = vadd.f32 %v1371_v7, %v1358_v6 }
 0x5de   : > { %v1556_v10 = vmul.f32 -1.442695, %v1379_v8 }
 0x5df   : > { %v1555_v11 = vmul.f32 -1.442695, %v1378_v9 }
 0x5e0   : > { %1732 = vpow2.f32 %v1556_v10 }
 0x5e1   : > { %1734 = vpow2.f32 %v1555_v11 }
 0x5ea   : > { %v1733_v13 = vpop.eup %1732 }
 0x5eb   : > { %v1735_v14 = vpop.eup %1734  ;;  %v1387_v16 = vadd.f32 1.0, %v1733_v13 }
 0x5ec   : > { %v1386_v17 = vadd.f32 1.0, %v1735_v14 }
 0x5ed   : > { %1736 = vrcp.f32 %v1387_v16 }
 0x5ee   : > { %1738 = vrcp.f32 %v1386_v17 }
 0x5f5   : > { %1402 = sbr.rel (!%p1939_p5) target bundleno = 1540 (0x604), region = 88 }
 0x5f7   : > { %v1737_v18 = vpop.eup %1736 }
 0x5f8   : > { %v1739_v2 = vpop.eup %1738  ;;  %v1393_v19 = vmul.f32 %v1737_v18, %v1379_v8 }
 0x5f9   : > { %v1392_v21 = vmul.f32 %v1739_v2, %v1378_v9 }
 0x5fa   : > { %1395 = vst [vmem:[%s547_s29 + $0x8] sm:$0xff] %v1393_v19 }
 0x5fb   : > { %1394 = vst [vmem:[%s547_s29] sm:$0xff] %v1392_v21 }
 0x601   : > { %v1438_v20 = vld [vmem:[%s547_s29 + $0x8] sm:$0xff] }
 0x602   : > { %v1436_v23 = vld [vmem:[%s547_s29] sm:$0xff]  ;;  %1439 = vst [vmem:[%s1406_s0 + $0x10] sm:$0xff] %v1438_v20 }
 0x603   : > { %1437 = vst [vmem:[%s1406_s0] sm:$0xff] %v1436_v23 }
 0x604 PF: > { %s26_s27 = sadd.s32 1, %s1794_s27   ;;  %s2154_s17 = sld [smem:[#allocation7_spill]] }
 0x605   : > { %p23_p11 = scmp.ge.s32.totalorder %s26_s27, 6   ;;  %s2155_s23 = sld [smem:[#allocation3_spill]] }
 0x606   : > { %s2156_s24 = sld [smem:[#allocation4_spill]]  ;;  %s2157_s25 = sld [smem:[#allocation5_spill]] }
 0x607   : > { %s2158_s26 = sld [smem:[#allocation6_spill]]  ;;  %s2159_s21 = smov %s1774_s22 }
 0x608   :  { %25 = sbr.rel (!%p23_p11) target bundleno = 8 (0x8), region = 155 }
 0x60a   : > { %s2160_s22 = smov %s2154_s17 }

</bundles_post_ra>
